<compile_context>
chip_gen: v6e
topology: v6e:2x2x1
jax: 0.10.0
libtpu: 0.0.40
codegen_flags: <defaults>
</compile_context>

<pallas_src>
import functools

import jax
import jax.numpy as jnp
from jax.experimental import pallas as pl
from jax.experimental.pallas import tpu as pltpu

_PARAM_KEYS = ("wq", "bq", "wk", "bk", "wv", "bv", "wo", "bo",
               "g1", "bln1", "w1", "b1", "w2", "b2", "g2", "bln2")


def _layer_norm(x, gamma, beta, eps):
    mu = jnp.mean(x, axis=-1, keepdims=True)
    var = jnp.mean((x - mu) ** 2, axis=-1, keepdims=True)
    return (x - mu) * jax.lax.rsqrt(var + eps) * gamma + beta


def _fused_encoder_kernel(x_ref,
                          wq_ref, bq_ref, wk_ref, bk_ref, wv_ref, bv_ref,
                          wo_ref, bo_ref, g1_ref, bln1_ref,
                          w1_ref, b1_ref, w2_ref, b2_ref, g2_ref, bln2_ref,
                          out_ref, x_carry,
                          *, num_heads, eps):
    """One post-norm TransformerEncoderLayer per grid step; x carried in VMEM scratch."""
    layer = pl.program_id(0)

    @pl.when(layer == 0)
    def _():
        x_carry[...] = x_ref[...].astype(jnp.float32)

    x = x_carry[...]                                    # [L, D] f32
    L, D = x.shape
    H = num_heads

    # --- multi-head self-attention, heads batched on the leading axis ---------------
    xb = jnp.broadcast_to(x.astype(jnp.bfloat16)[None], (H, L, D))     # [H, L, D] bf16
    q = jnp.einsum('hld,hdk->hlk', xb, wq_ref[...],
                   preferred_element_type=jnp.float32) + bq_ref[...]   # [H, L, hd]
    k = jnp.einsum('hld,hdk->hlk', xb, wk_ref[...],
                   preferred_element_type=jnp.float32) + bk_ref[...]
    v = jnp.einsum('hld,hdk->hlk', xb, wv_ref[...],
                   preferred_element_type=jnp.float32) + bv_ref[...]

    # NOTE: 1/sqrt(head_dim) is pre-folded into wq/bq at parameter-packing time.
    s = jnp.einsum('hlk,hmk->hlm', q, k, preferred_element_type=jnp.float32)  # [H, L, L]
    s = s - jnp.max(s, axis=-1, keepdims=True)
    p = jnp.exp(s)
    p = p * pl.reciprocal(jnp.sum(p, axis=-1, keepdims=True), approx=True)
    o = jnp.einsum('hlm,hmk->hlk', p, v, preferred_element_type=jnp.float32)  # [H, L, hd]

    # output projection: per-head matmul then reduce over the (major) head axis.
    attn = jnp.sum(
        jnp.einsum('hlk,hkj->hlj', o.astype(jnp.bfloat16), wo_ref[...],
                   preferred_element_type=jnp.float32),
        axis=0) + bo_ref[...]                                                  # [L, D]

    x1 = _layer_norm(x + attn, g1_ref[...], bln1_ref[...], eps)

    # --- feed-forward -----------------------------------------------------------------
    h1 = jnp.dot(x1.astype(jnp.bfloat16), w1_ref[...],
                 preferred_element_type=jnp.float32) + b1_ref[...]
    h1 = jnp.maximum(h1, 0.0)                                                  # ReLU
    ff = jnp.dot(h1.astype(jnp.bfloat16), w2_ref[...],
                 preferred_element_type=jnp.float32) + b2_ref[...]

    x2 = _layer_norm(x1 + ff, g2_ref[...], bln2_ref[...], eps)
    x_carry[...] = x2
    out_ref[...] = x2.astype(out_ref.dtype)


def _stacked_spec(per_layer_shape):
    """BlockSpec for a [num_layers, *per_layer_shape] array: layer axis squeezed,
    block index along it = grid step, so Pallas pipelines next layer's weight DMA."""
    n = len(per_layer_shape)
    return pl.BlockSpec((None,) + tuple(per_layer_shape),
                        lambda l, _n=n: (l,) + (0,) * _n)


@functools.partial(jax.jit, static_argnames=("num_heads",))
def graphormer_forward(label_embeddings, label_graph, params, *, num_heads=8):
    # label_graph is accepted but unused, matching the PyTorch forward.
    del label_graph
    x = label_embeddings.astype(jnp.float32)            # [L, D]
    L, D = x.shape
    num_layers = params["wq"].shape[0]

    kernel = functools.partial(_fused_encoder_kernel, num_heads=num_heads, eps=1e-5)
    in_specs = [pl.BlockSpec((L, D), lambda l: (0, 0))]
    in_specs += [_stacked_spec(params[k].shape[1:]) for k in _PARAM_KEYS]

    grid_spec = pltpu.PrefetchScalarGridSpec(
        num_scalar_prefetch=0,
        grid=(num_layers,),
        in_specs=in_specs,
        out_specs=pl.BlockSpec((L, D), lambda l: (0, 0)),
        scratch_shapes=[pltpu.VMEM((L, D), jnp.float32)],
    )
    return pl.pallas_call(
        kernel,
        out_shape=jax.ShapeDtypeStruct((L, D), jnp.float32),
        grid_spec=grid_spec,
        compiler_params=pltpu.CompilerParams(dimension_semantics=("arbitrary",)),
    )(x, *[params[k] for k in _PARAM_KEYS])


def init_torch_style_params(key, hidden_size, num_layers=2, dim_feedforward=2048):
    """Deterministic synthetic parameters in PyTorch nn.TransformerEncoderLayer layout."""
    d, dff = hidden_size, dim_feedforward
    layers = []
    for _ in range(num_layers):
        key, k1, k2, k3, k4, k5, k6 = jax.random.split(key, 7)
        layers.append({
            "in_proj_weight": jax.random.normal(k1, (3 * d, d), jnp.float32) * 0.02,
            "in_proj_bias":   jax.random.normal(k2, (3 * d,), jnp.float32) * 0.02,
            "out_proj_weight": jax.random.normal(k3, (d, d), jnp.float32) * 0.02,
            "out_proj_bias":   jnp.zeros((d,), jnp.float32),
            "ln1_weight": jnp.ones((d,), jnp.float32),
            "ln1_bias":   jnp.zeros((d,), jnp.float32),
            "linear1_weight": jax.random.normal(k4, (dff, d), jnp.float32) * 0.02,
            "linear1_bias":   jax.random.normal(k5, (dff,), jnp.float32) * 0.02,
            "linear2_weight": jax.random.normal(k6, (d, dff), jnp.float32) * 0.02,
            "linear2_bias":   jnp.zeros((d,), jnp.float32),
            "ln2_weight": jnp.ones((d,), jnp.float32),
            "ln2_bias":   jnp.zeros((d,), jnp.float32),
        })
    return layers


def pack_params_for_kernel(torch_layers, num_heads):
    """Repack PyTorch-layout params into the stacked, per-head, bf16 kernel layout.

    - weights pre-transposed to [in, out] and cast to bf16 (halves weight DMA bytes);
    - QKV / out-proj weights split per head ([H, D, hd] / [H, hd, D]) so the kernel
      runs leading-batch einsums with no lane-granularity slicing or concatenation;
    - the 1/sqrt(head_dim) attention scale is folded into the Q weights and bias.
    Biases / LayerNorm params stay f32 (VPU/EUP math stays f32, incl. on v5e).
    """
    stacked = {k: [] for k in _PARAM_KEYS}
    H = num_heads
    for lp in torch_layers:
        d = lp["out_proj_weight"].shape[0]
        hd = d // H
        scale = 1.0 / (hd ** 0.5)
        w_in = lp["in_proj_weight"]            # [3d, d]  (PyTorch: q|k|v = x @ W.T + b)
        b_in = lp["in_proj_bias"]              # [3d]

        def split_heads(w_block, b_block):
            w_t = w_block.T                                   # [d_in, d_out]
            w_h = w_t.reshape(d, H, hd).transpose(1, 0, 2)    # [H, d_in, hd]
            b_h = b_block.reshape(H, 1, hd)                   # [H, 1, hd]
            return w_h, b_h

        wq_h, bq_h = split_heads(w_in[0 * d:1 * d], b_in[0 * d:1 * d])
        wk_h, bk_h = split_heads(w_in[1 * d:2 * d], b_in[1 * d:2 * d])
        wv_h, bv_h = split_heads(w_in[2 * d:3 * d], b_in[2 * d:3 * d])
        wq_h, bq_h = wq_h * scale, bq_h * scale               # fold softmax scale into Q
        wo_h = lp["out_proj_weight"].T.reshape(H, hd, d)      # [H, hd, d_out]

        stacked["wq"].append(wq_h.astype(jnp.bfloat16))
        stacked["bq"].append(bq_h)
        stacked["wk"].append(wk_h.astype(jnp.bfloat16))
        stacked["bk"].append(bk_h)
        stacked["wv"].append(wv_h.astype(jnp.bfloat16))
        stacked["bv"].append(bv_h)
        stacked["wo"].append(wo_h.astype(jnp.bfloat16))
        stacked["bo"].append(lp["out_proj_bias"].reshape(1, d))
        stacked["g1"].append(lp["ln1_weight"].reshape(1, d))
        stacked["bln1"].append(lp["ln1_bias"].reshape(1, d))
        stacked["w1"].append(lp["linear1_weight"].T.astype(jnp.bfloat16))   # [d, dff]
        stacked["b1"].append(lp["linear1_bias"].reshape(1, -1))
        stacked["w2"].append(lp["linear2_weight"].T.astype(jnp.bfloat16))   # [dff, d]
        stacked["b2"].append(lp["linear2_bias"].reshape(1, d))
        stacked["g2"].append(lp["ln2_weight"].reshape(1, d))
        stacked["bln2"].append(lp["ln2_bias"].reshape(1, d))
    return {k: jnp.stack(v) for k, v in stacked.items()}


if __name__ == "__main__":
    hidden_size = 32          # d_model (divisible by nhead=8 -> head_dim=4)
    num_labels = 8            # sequence length L
    num_heads = 8

    key = jax.random.PRNGKey(0)
    k_emb, k_graph, k_params = jax.random.split(key, 3)

    label_embeddings = jax.random.normal(k_emb, (num_labels, hidden_size), jnp.float32)
    label_graph = jax.random.normal(k_graph, (num_labels, num_labels), jnp.float32)

    torch_layers = init_torch_style_params(k_params, hidden_size, num_layers=2)
    params = pack_params_for_kernel(torch_layers, num_heads)

    out = graphormer_forward(label_embeddings, label_graph, params, num_heads=num_heads)
    out = jax.block_until_ready(out)

    assert out.shape == (num_labels, hidden_size)
    assert bool(jnp.all(jnp.isfinite(out)))
    print("KERNEL_OK")
</pallas_src>

<mosaic_0001>
module attributes {stable_mosaic.version = 11 : i64} {
  func.func @_fused_encoder_kernel(%arg0: i32, %arg1: memref<8x32xf32, #tpu.memory_space<vmem>>, %arg2: memref<1x8x32x4xbf16, #tpu.memory_space<vmem>>, %arg3: memref<1x8x1x4xf32, #tpu.memory_space<vmem>>, %arg4: memref<1x8x32x4xbf16, #tpu.memory_space<vmem>>, %arg5: memref<1x8x1x4xf32, #tpu.memory_space<vmem>>, %arg6: memref<1x8x32x4xbf16, #tpu.memory_space<vmem>>, %arg7: memref<1x8x1x4xf32, #tpu.memory_space<vmem>>, %arg8: memref<1x8x4x32xbf16, #tpu.memory_space<vmem>>, %arg9: memref<1x1x32xf32, #tpu.memory_space<vmem>>, %arg10: memref<1x1x32xf32, #tpu.memory_space<vmem>>, %arg11: memref<1x1x32xf32, #tpu.memory_space<vmem>>, %arg12: memref<1x32x2048xbf16, #tpu.memory_space<vmem>>, %arg13: memref<1x1x2048xf32, #tpu.memory_space<vmem>>, %arg14: memref<1x2048x32xbf16, #tpu.memory_space<vmem>>, %arg15: memref<1x1x32xf32, #tpu.memory_space<vmem>>, %arg16: memref<1x1x32xf32, #tpu.memory_space<vmem>>, %arg17: memref<1x1x32xf32, #tpu.memory_space<vmem>>, %arg18: memref<8x32xf32, #tpu.memory_space<vmem>>, %arg19: memref<8x32xf32, #tpu.memory_space<vmem>>) attributes {dimension_semantics = [#tpu.dimension_semantics<arbitrary>], iteration_bounds = array<i64: 2>, scalar_prefetch = 0 : i64, scratch_operands = 1 : i64, tpu.core_type = #tpu.core_type<tc>, window_params = [{pipeline_mode = #tpu.pipeline_mode<synchronous>, transform_indices = @transform_0, window_bounds = array<i64: 8, 32>}, {transform_indices = @transform_1, window_bounds = array<i64: 1, 8, 32, 4>}, {transform_indices = @transform_2, window_bounds = array<i64: 1, 8, 1, 4>}, {transform_indices = @transform_3, window_bounds = array<i64: 1, 8, 32, 4>}, {transform_indices = @transform_4, window_bounds = array<i64: 1, 8, 1, 4>}, {transform_indices = @transform_5, window_bounds = array<i64: 1, 8, 32, 4>}, {transform_indices = @transform_6, window_bounds = array<i64: 1, 8, 1, 4>}, {transform_indices = @transform_7, window_bounds = array<i64: 1, 8, 4, 32>}, {transform_indices = @transform_8, window_bounds = array<i64: 1, 1, 32>}, {transform_indices = @transform_9, window_bounds = array<i64: 1, 1, 32>}, {transform_indices = @transform_10, window_bounds = array<i64: 1, 1, 32>}, {transform_indices = @transform_11, window_bounds = array<i64: 1, 32, 2048>}, {transform_indices = @transform_12, window_bounds = array<i64: 1, 1, 2048>}, {transform_indices = @transform_13, window_bounds = array<i64: 1, 2048, 32>}, {transform_indices = @transform_14, window_bounds = array<i64: 1, 1, 32>}, {transform_indices = @transform_15, window_bounds = array<i64: 1, 1, 32>}, {transform_indices = @transform_16, window_bounds = array<i64: 1, 1, 32>}, {pipeline_mode = #tpu.pipeline_mode<synchronous>, transform_indices = @transform_17, window_bounds = array<i64: 8, 32>}]} {
    %c0_i32 = arith.constant 0 : i32
    %0 = arith.cmpi eq, %arg0, %c0_i32 : i32
    %1 = arith.extui %0 : i1 to i32
    %c0_i32_0 = arith.constant 0 : i32
    %2 = arith.cmpi ne, %1, %c0_i32_0 : i32
    scf.if %2 {
      %c0_82 = arith.constant 0 : index
      %c0_83 = arith.constant 0 : index
      %124 = vector.load %arg1[%c0_82, %c0_83] : memref<8x32xf32, #tpu.memory_space<vmem>>, vector<8x32xf32>
      %c0_84 = arith.constant 0 : index
      %c0_85 = arith.constant 0 : index
      %125 = vector.load %arg19[%c0_84, %c0_85] : memref<8x32xf32, #tpu.memory_space<vmem>>, vector<8x32xf32>
      tpu.vector_store %arg19[%c0_84, %c0_85], %124 {strides = array<i32>} : memref<8x32xf32, #tpu.memory_space<vmem>>, vector<8x32xf32>,
    } else {
    }
    %c0 = arith.constant 0 : index
    %c0_1 = arith.constant 0 : index
    %3 = vector.load %arg19[%c0, %c0_1] : memref<8x32xf32, #tpu.memory_space<vmem>>, vector<8x32xf32>
    %4 = arith.truncf %3 : vector<8x32xf32> to vector<8x32xbf16>
    %5 = vector.shape_cast %4 : vector<8x32xbf16> to vector<1x8x32xbf16>
    %6 = vector.shape_cast %5 : vector<1x8x32xbf16> to vector<1x8x32xbf16>
    %7 = vector.broadcast %6 : vector<1x8x32xbf16> to vector<8x8x32xbf16>
    %c0_2 = arith.constant 0 : index
    %c0_3 = arith.constant 0 : index
    %c0_4 = arith.constant 0 : index
    %c0_5 = arith.constant 0 : index
    %8 = vector.load %arg2[%c0_2, %c0_3, %c0_4, %c0_5] : memref<1x8x32x4xbf16, #tpu.memory_space<vmem>>, vector<1x8x32x4xbf16>
    %9 = vector.shape_cast %8 : vector<1x8x32x4xbf16> to vector<8x32x4xbf16>
    "tpu.trace_start"() <{level = 10 : i32, message = "hld,hdk->hlk"}> : () -> ()
    %cst = arith.constant dense<0.000000e+00> : vector<8x8x4xf32>
    %10 = tpu.matmul %7, %9, %cst {dimension_numbers = #tpu.dot_dimension_numbers<[2], [1], [1], [2], [0, 0, 0, 1, 1, 2], [0], [0]>} : vector<8x8x32xbf16>, vector<8x32x4xbf16>, vector<8x8x4xf32> -> vector<8x8x4xf32>
    "tpu.trace_stop"() : () -> ()
    %c0_6 = arith.constant 0 : index
    %c0_7 = arith.constant 0 : index
    %c0_8 = arith.constant 0 : index
    %c0_9 = arith.constant 0 : index
    %11 = vector.load %arg3[%c0_6, %c0_7, %c0_8, %c0_9] : memref<1x8x1x4xf32, #tpu.memory_space<vmem>>, vector<1x8x1x4xf32>
    %12 = vector.shape_cast %11 : vector<1x8x1x4xf32> to vector<8x1x4xf32>
    %13 = vector.broadcast %12 : vector<8x1x4xf32> to vector<8x8x4xf32>
    %14 = arith.addf %10, %13 : vector<8x8x4xf32>
    %c0_10 = arith.constant 0 : index
    %c0_11 = arith.constant 0 : index
    %c0_12 = arith.constant 0 : index
    %c0_13 = arith.constant 0 : index
    %15 = vector.load %arg4[%c0_10, %c0_11, %c0_12, %c0_13] : memref<1x8x32x4xbf16, #tpu.memory_space<vmem>>, vector<1x8x32x4xbf16>
    %16 = vector.shape_cast %15 : vector<1x8x32x4xbf16> to vector<8x32x4xbf16>
    "tpu.trace_start"() <{level = 10 : i32, message = "hld,hdk->hlk"}> : () -> ()
    %cst_14 = arith.constant dense<0.000000e+00> : vector<8x8x4xf32>
    %17 = tpu.matmul %7, %16, %cst_14 {dimension_numbers = #tpu.dot_dimension_numbers<[2], [1], [1], [2], [0, 0, 0, 1, 1, 2], [0], [0]>} : vector<8x8x32xbf16>, vector<8x32x4xbf16>, vector<8x8x4xf32> -> vector<8x8x4xf32>
    "tpu.trace_stop"() : () -> ()
    %c0_15 = arith.constant 0 : index
    %c0_16 = arith.constant 0 : index
    %c0_17 = arith.constant 0 : index
    %c0_18 = arith.constant 0 : index
    %18 = vector.load %arg5[%c0_15, %c0_16, %c0_17, %c0_18] : memref<1x8x1x4xf32, #tpu.memory_space<vmem>>, vector<1x8x1x4xf32>
    %19 = vector.shape_cast %18 : vector<1x8x1x4xf32> to vector<8x1x4xf32>
    %20 = vector.broadcast %19 : vector<8x1x4xf32> to vector<8x8x4xf32>
    %21 = arith.addf %17, %20 : vector<8x8x4xf32>
    %c0_19 = arith.constant 0 : index
    %c0_20 = arith.constant 0 : index
    %c0_21 = arith.constant 0 : index
    %c0_22 = arith.constant 0 : index
    %22 = vector.load %arg6[%c0_19, %c0_20, %c0_21, %c0_22] : memref<1x8x32x4xbf16, #tpu.memory_space<vmem>>, vector<1x8x32x4xbf16>
    %23 = vector.shape_cast %22 : vector<1x8x32x4xbf16> to vector<8x32x4xbf16>
    "tpu.trace_start"() <{level = 10 : i32, message = "hld,hdk->hlk"}> : () -> ()
    %cst_23 = arith.constant dense<0.000000e+00> : vector<8x8x4xf32>
    %24 = tpu.matmul %7, %23, %cst_23 {dimension_numbers = #tpu.dot_dimension_numbers<[2], [1], [1], [2], [0, 0, 0, 1, 1, 2], [0], [0]>} : vector<8x8x32xbf16>, vector<8x32x4xbf16>, vector<8x8x4xf32> -> vector<8x8x4xf32>
    "tpu.trace_stop"() : () -> ()
    %c0_24 = arith.constant 0 : index
    %c0_25 = arith.constant 0 : index
    %c0_26 = arith.constant 0 : index
    %c0_27 = arith.constant 0 : index
    %25 = vector.load %arg7[%c0_24, %c0_25, %c0_26, %c0_27] : memref<1x8x1x4xf32, #tpu.memory_space<vmem>>, vector<1x8x1x4xf32>
    %26 = vector.shape_cast %25 : vector<1x8x1x4xf32> to vector<8x1x4xf32>
    %27 = vector.broadcast %26 : vector<8x1x4xf32> to vector<8x8x4xf32>
    %28 = arith.addf %24, %27 : vector<8x8x4xf32>
    "tpu.trace_start"() <{level = 10 : i32, message = "hlk,hmk->hlm"}> : () -> ()
    %cst_28 = arith.constant dense<0.000000e+00> : vector<8x8x8xf32>
    %29 = tpu.matmul %14, %21, %cst_28 {dimension_numbers = #tpu.dot_dimension_numbers<[2], [2], [1], [1], [0, 0, 0, 1, 1, 1], [0], [0]>} : vector<8x8x4xf32>, vector<8x8x4xf32>, vector<8x8x8xf32> -> vector<8x8x8xf32>
    "tpu.trace_stop"() : () -> ()
    %cst_29 = arith.constant dense<0xFF800000> : vector<8x8xf32>
    %30 = vector.multi_reduction <maximumf>, %29, %cst_29 [2] : vector<8x8x8xf32> to vector<8x8xf32>
    %31 = vector.shape_cast %30 : vector<8x8xf32> to vector<8x8x1xf32>
    %32 = vector.broadcast %31 : vector<8x8x1xf32> to vector<8x8x8xf32>
    %33 = arith.subf %29, %32 : vector<8x8x8xf32>
    %34 = math.exp %33 : vector<8x8x8xf32>
    %cst_30 = arith.constant dense<0.000000e+00> : vector<8x8xf32>
    %35 = vector.multi_reduction <add>, %34, %cst_30 [2] : vector<8x8x8xf32> to vector<8x8xf32>
    %36 = vector.shape_cast %35 : vector<8x8xf32> to vector<8x8x1xf32>
    %37 = tpu.reciprocal %36 {approx = true} : vector<8x8x1xf32> -> vector<8x8x1xf32>
    %38 = vector.broadcast %37 : vector<8x8x1xf32> to vector<8x8x8xf32>
    %39 = arith.mulf %34, %38 : vector<8x8x8xf32>
    "tpu.trace_start"() <{level = 10 : i32, message = "hlm,hmk->hlk"}> : () -> ()
    %cst_31 = arith.constant dense<0.000000e+00> : vector<8x8x4xf32>
    %40 = tpu.matmul %39, %28, %cst_31 {dimension_numbers = #tpu.dot_dimension_numbers<[2], [1], [1], [2], [0, 0, 0, 1, 1, 2], [0], [0]>} : vector<8x8x8xf32>, vector<8x8x4xf32>, vector<8x8x4xf32> -> vector<8x8x4xf32>
    "tpu.trace_stop"() : () -> ()
    %41 = arith.truncf %40 : vector<8x8x4xf32> to vector<8x8x4xbf16>
    %c0_32 = arith.constant 0 : index
    %c0_33 = arith.constant 0 : index
    %c0_34 = arith.constant 0 : index
    %c0_35 = arith.constant 0 : index
    %42 = vector.load %arg8[%c0_32, %c0_33, %c0_34, %c0_35] : memref<1x8x4x32xbf16, #tpu.memory_space<vmem>>, vector<1x8x4x32xbf16>
    %43 = vector.shape_cast %42 : vector<1x8x4x32xbf16> to vector<8x4x32xbf16>
    "tpu.trace_start"() <{level = 10 : i32, message = "hlk,hkj->hlj"}> : () -> ()
    %cst_36 = arith.constant dense<0.000000e+00> : vector<8x8x32xf32>
    %44 = tpu.matmul %41, %43, %cst_36 {dimension_numbers = #tpu.dot_dimension_numbers<[2], [1], [1], [2], [0, 0, 0, 1, 1, 2], [0], [0]>} : vector<8x8x4xbf16>, vector<8x4x32xbf16>, vector<8x8x32xf32> -> vector<8x8x32xf32>
    "tpu.trace_stop"() : () -> ()
    %cst_37 = arith.constant dense<0.000000e+00> : vector<8x32xf32>
    %45 = vector.multi_reduction <add>, %44, %cst_37 [0] : vector<8x8x32xf32> to vector<8x32xf32>
    %c0_38 = arith.constant 0 : index
    %c0_39 = arith.constant 0 : index
    %c0_40 = arith.constant 0 : index
    %46 = vector.load %arg9[%c0_38, %c0_39, %c0_40] : memref<1x1x32xf32, #tpu.memory_space<vmem>>, vector<1x1x32xf32>
    %47 = vector.shape_cast %46 : vector<1x1x32xf32> to vector<1x32xf32>
    %48 = vector.broadcast %47 : vector<1x32xf32> to vector<8x32xf32>
    %49 = arith.addf %45, %48 : vector<8x32xf32>
    %50 = arith.addf %3, %49 : vector<8x32xf32>
    %c0_41 = arith.constant 0 : index
    %c0_42 = arith.constant 0 : index
    %c0_43 = arith.constant 0 : index
    %51 = vector.load %arg10[%c0_41, %c0_42, %c0_43] : memref<1x1x32xf32, #tpu.memory_space<vmem>>, vector<1x1x32xf32>
    %52 = vector.shape_cast %51 : vector<1x1x32xf32> to vector<1x32xf32>
    %c0_44 = arith.constant 0 : index
    %c0_45 = arith.constant 0 : index
    %c0_46 = arith.constant 0 : index
    %53 = vector.load %arg11[%c0_44, %c0_45, %c0_46] : memref<1x1x32xf32, #tpu.memory_space<vmem>>, vector<1x1x32xf32>
    %54 = vector.shape_cast %53 : vector<1x1x32xf32> to vector<1x32xf32>
    %cst_47 = arith.constant dense<0.000000e+00> : vector<8xf32>
    %55 = vector.multi_reduction <add>, %50, %cst_47 [1] : vector<8x32xf32> to vector<8xf32>
    %56 = vector.shape_cast %55 : vector<8xf32> to vector<8x1xf32>
    %cst_48 = arith.constant 3.200000e+01 : f32
    %57 = vector.broadcast %cst_48 : f32 to vector<8x1xf32>
    %58 = arith.divf %56, %57 : vector<8x1xf32>
    %59 = vector.broadcast %58 : vector<8x1xf32> to vector<8x32xf32>
    %60 = arith.subf %50, %59 : vector<8x32xf32>
    %61 = arith.mulf %60, %60 : vector<8x32xf32>
    %cst_49 = arith.constant dense<0.000000e+00> : vector<8xf32>
    %62 = vector.multi_reduction <add>, %61, %cst_49 [1] : vector<8x32xf32> to vector<8xf32>
    %63 = vector.shape_cast %62 : vector<8xf32> to vector<8x1xf32>
    %cst_50 = arith.constant 3.200000e+01 : f32
    %64 = vector.broadcast %cst_50 : f32 to vector<8x1xf32>
    %65 = arith.divf %63, %64 : vector<8x1xf32>
    %66 = vector.broadcast %58 : vector<8x1xf32> to vector<8x32xf32>
    %67 = arith.subf %50, %66 : vector<8x32xf32>
    %cst_51 = arith.constant 9.99999974E-6 : f32
    %68 = vector.broadcast %cst_51 : f32 to vector<8x1xf32>
    %69 = arith.addf %65, %68 : vector<8x1xf32>
    %70 = math.rsqrt %69 : vector<8x1xf32>
    %71 = vector.broadcast %70 : vector<8x1xf32> to vector<8x32xf32>
    %72 = arith.mulf %67, %71 : vector<8x32xf32>
    %73 = vector.broadcast %52 : vector<1x32xf32> to vector<8x32xf32>
    %74 = arith.mulf %72, %73 : vector<8x32xf32>
    %75 = vector.broadcast %54 : vector<1x32xf32> to vector<8x32xf32>
    %76 = arith.addf %74, %75 : vector<8x32xf32>
    %77 = arith.truncf %76 : vector<8x32xf32> to vector<8x32xbf16>
    %c0_52 = arith.constant 0 : index
    %c0_53 = arith.constant 0 : index
    %c0_54 = arith.constant 0 : index
    %78 = vector.load %arg12[%c0_52, %c0_53, %c0_54] : memref<1x32x2048xbf16, #tpu.memory_space<vmem>>, vector<1x32x2048xbf16>
    %79 = vector.shape_cast %78 : vector<1x32x2048xbf16> to vector<32x2048xbf16>
    %cst_55 = arith.constant dense<0.000000e+00> : vector<8x2048xf32>
    %80 = tpu.matmul %77, %79, %cst_55 {dimension_numbers = #tpu.dot_dimension_numbers<[1], [0], [0], [1], [0, 0, 1, 1], [], []>} : vector<8x32xbf16>, vector<32x2048xbf16>, vector<8x2048xf32> -> vector<8x2048xf32>
    %c0_56 = arith.constant 0 : index
    %c0_57 = arith.constant 0 : index
    %c0_58 = arith.constant 0 : index
    %81 = vector.load %arg13[%c0_56, %c0_57, %c0_58] : memref<1x1x2048xf32, #tpu.memory_space<vmem>>, vector<1x1x2048xf32>
    %82 = vector.shape_cast %81 : vector<1x1x2048xf32> to vector<1x2048xf32>
    %83 = vector.broadcast %82 : vector<1x2048xf32> to vector<8x2048xf32>
    %84 = arith.addf %80, %83 : vector<8x2048xf32>
    %cst_59 = arith.constant 0.000000e+00 : f32
    %85 = vector.broadcast %cst_59 : f32 to vector<8x2048xf32>
    %86 = arith.maximumf %84, %85 : vector<8x2048xf32>
    %87 = arith.truncf %86 : vector<8x2048xf32> to vector<8x2048xbf16>
    %c0_60 = arith.constant 0 : index
    %c0_61 = arith.constant 0 : index
    %c0_62 = arith.constant 0 : index
    %88 = vector.load %arg14[%c0_60, %c0_61, %c0_62] : memref<1x2048x32xbf16, #tpu.memory_space<vmem>>, vector<1x2048x32xbf16>
    %89 = vector.shape_cast %88 : vector<1x2048x32xbf16> to vector<2048x32xbf16>
    %cst_63 = arith.constant dense<0.000000e+00> : vector<8x32xf32>
    %90 = tpu.matmul %87, %89, %cst_63 {dimension_numbers = #tpu.dot_dimension_numbers<[1], [0], [0], [1], [0, 0, 1, 1], [], []>} : vector<8x2048xbf16>, vector<2048x32xbf16>, vector<8x32xf32> -> vector<8x32xf32>
    %c0_64 = arith.constant 0 : index
    %c0_65 = arith.constant 0 : index
    %c0_66 = arith.constant 0 : index
    %91 = vector.load %arg15[%c0_64, %c0_65, %c0_66] : memref<1x1x32xf32, #tpu.memory_space<vmem>>, vector<1x1x32xf32>
    %92 = vector.shape_cast %91 : vector<1x1x32xf32> to vector<1x32xf32>
    %93 = vector.broadcast %92 : vector<1x32xf32> to vector<8x32xf32>
    %94 = arith.addf %90, %93 : vector<8x32xf32>
    %95 = arith.addf %76, %94 : vector<8x32xf32>
    %c0_67 = arith.constant 0 : index
    %c0_68 = arith.constant 0 : index
    %c0_69 = arith.constant 0 : index
    %96 = vector.load %arg16[%c0_67, %c0_68, %c0_69] : memref<1x1x32xf32, #tpu.memory_space<vmem>>, vector<1x1x32xf32>
    %97 = vector.shape_cast %96 : vector<1x1x32xf32> to vector<1x32xf32>
    %c0_70 = arith.constant 0 : index
    %c0_71 = arith.constant 0 : index
    %c0_72 = arith.constant 0 : index
    %98 = vector.load %arg17[%c0_70, %c0_71, %c0_72] : memref<1x1x32xf32, #tpu.memory_space<vmem>>, vector<1x1x32xf32>
    %99 = vector.shape_cast %98 : vector<1x1x32xf32> to vector<1x32xf32>
    %cst_73 = arith.constant dense<0.000000e+00> : vector<8xf32>
    %100 = vector.multi_reduction <add>, %95, %cst_73 [1] : vector<8x32xf32> to vector<8xf32>
    %101 = vector.shape_cast %100 : vector<8xf32> to vector<8x1xf32>
    %cst_74 = arith.constant 3.200000e+01 : f32
    %102 = vector.broadcast %cst_74 : f32 to vector<8x1xf32>
    %103 = arith.divf %101, %102 : vector<8x1xf32>
    %104 = vector.broadcast %103 : vector<8x1xf32> to vector<8x32xf32>
    %105 = arith.subf %95, %104 : vector<8x32xf32>
    %106 = arith.mulf %105, %105 : vector<8x32xf32>
    %cst_75 = arith.constant dense<0.000000e+00> : vector<8xf32>
    %107 = vector.multi_reduction <add>, %106, %cst_75 [1] : vector<8x32xf32> to vector<8xf32>
    %108 = vector.shape_cast %107 : vector<8xf32> to vector<8x1xf32>
    %cst_76 = arith.constant 3.200000e+01 : f32
    %109 = vector.broadcast %cst_76 : f32 to vector<8x1xf32>
    %110 = arith.divf %108, %109 : vector<8x1xf32>
    %111 = vector.broadcast %103 : vector<8x1xf32> to vector<8x32xf32>
    %112 = arith.subf %95, %111 : vector<8x32xf32>
    %cst_77 = arith.constant 9.99999974E-6 : f32
    %113 = vector.broadcast %cst_77 : f32 to vector<8x1xf32>
    %114 = arith.addf %110, %113 : vector<8x1xf32>
    %115 = math.rsqrt %114 : vector<8x1xf32>
    %116 = vector.broadcast %115 : vector<8x1xf32> to vector<8x32xf32>
    %117 = arith.mulf %112, %116 : vector<8x32xf32>
    %118 = vector.broadcast %97 : vector<1x32xf32> to vector<8x32xf32>
    %119 = arith.mulf %117, %118 : vector<8x32xf32>
    %120 = vector.broadcast %99 : vector<1x32xf32> to vector<8x32xf32>
    %121 = arith.addf %119, %120 : vector<8x32xf32>
    %c0_78 = arith.constant 0 : index
    %c0_79 = arith.constant 0 : index
    %122 = vector.load %arg19[%c0_78, %c0_79] : memref<8x32xf32, #tpu.memory_space<vmem>>, vector<8x32xf32>
    tpu.vector_store %arg19[%c0_78, %c0_79], %121 {strides = array<i32>} : memref<8x32xf32, #tpu.memory_space<vmem>>, vector<8x32xf32>,
    %c0_80 = arith.constant 0 : index
    %c0_81 = arith.constant 0 : index
    %123 = vector.load %arg18[%c0_80, %c0_81] : memref<8x32xf32, #tpu.memory_space<vmem>>, vector<8x32xf32>
    tpu.vector_store %arg18[%c0_80, %c0_81], %121 {strides = array<i32>} : memref<8x32xf32, #tpu.memory_space<vmem>>, vector<8x32xf32>,
    return
  }
  func.func @transform_0(%arg0: i32) -> (i32, i32) {
    %c0_i32 = arith.constant 0 : i32
    %c0_i32_0 = arith.constant 0 : i32
    %c0_i32_1 = arith.constant 0 : i32
    return %c0_i32, %c0_i32_0 : i32, i32
  }
  func.func @transform_1(%arg0: i32) -> (i32, i32, i32, i32) {
    %c0_i32 = arith.constant 0 : i32
    %c0_i32_0 = arith.constant 0 : i32
    %c0_i32_1 = arith.constant 0 : i32
    %c0_i32_2 = arith.constant 0 : i32
    return %arg0, %c0_i32, %c0_i32_0, %c0_i32_1 : i32, i32, i32, i32
  }
  func.func @transform_2(%arg0: i32) -> (i32, i32, i32, i32) {
    %c0_i32 = arith.constant 0 : i32
    %c0_i32_0 = arith.constant 0 : i32
    %c0_i32_1 = arith.constant 0 : i32
    %c0_i32_2 = arith.constant 0 : i32
    return %arg0, %c0_i32, %c0_i32_0, %c0_i32_1 : i32, i32, i32, i32
  }
  func.func @transform_3(%arg0: i32) -> (i32, i32, i32, i32) {
    %c0_i32 = arith.constant 0 : i32
    %c0_i32_0 = arith.constant 0 : i32
    %c0_i32_1 = arith.constant 0 : i32
    %c0_i32_2 = arith.constant 0 : i32
    return %arg0, %c0_i32, %c0_i32_0, %c0_i32_1 : i32, i32, i32, i32
  }
  func.func @transform_4(%arg0: i32) -> (i32, i32, i32, i32) {
    %c0_i32 = arith.constant 0 : i32
    %c0_i32_0 = arith.constant 0 : i32
    %c0_i32_1 = arith.constant 0 : i32
    %c0_i32_2 = arith.constant 0 : i32
    return %arg0, %c0_i32, %c0_i32_0, %c0_i32_1 : i32, i32, i32, i32
  }
  func.func @transform_5(%arg0: i32) -> (i32, i32, i32, i32) {
    %c0_i32 = arith.constant 0 : i32
    %c0_i32_0 = arith.constant 0 : i32
    %c0_i32_1 = arith.constant 0 : i32
    %c0_i32_2 = arith.constant 0 : i32
    return %arg0, %c0_i32, %c0_i32_0, %c0_i32_1 : i32, i32, i32, i32
  }
  func.func @transform_6(%arg0: i32) -> (i32, i32, i32, i32) {
    %c0_i32 = arith.constant 0 : i32
    %c0_i32_0 = arith.constant 0 : i32
    %c0_i32_1 = arith.constant 0 : i32
    %c0_i32_2 = arith.constant 0 : i32
    return %arg0, %c0_i32, %c0_i32_0, %c0_i32_1 : i32, i32, i32, i32
  }
  func.func @transform_7(%arg0: i32) -> (i32, i32, i32, i32) {
    %c0_i32 = arith.constant 0 : i32
    %c0_i32_0 = arith.constant 0 : i32
    %c0_i32_1 = arith.constant 0 : i32
    %c0_i32_2 = arith.constant 0 : i32
    return %arg0, %c0_i32, %c0_i32_0, %c0_i32_1 : i32, i32, i32, i32
  }
  func.func @transform_8(%arg0: i32) -> (i32, i32, i32) {
    %c0_i32 = arith.constant 0 : i32
    %c0_i32_0 = arith.constant 0 : i32
    %c0_i32_1 = arith.constant 0 : i32
    return %arg0, %c0_i32, %c0_i32_0 : i32, i32, i32
  }
  func.func @transform_9(%arg0: i32) -> (i32, i32, i32) {
    %c0_i32 = arith.constant 0 : i32
    %c0_i32_0 = arith.constant 0 : i32
    %c0_i32_1 = arith.constant 0 : i32
    return %arg0, %c0_i32, %c0_i32_0 : i32, i32, i32
  }
  func.func @transform_10(%arg0: i32) -> (i32, i32, i32) {
    %c0_i32 = arith.constant 0 : i32
    %c0_i32_0 = arith.constant 0 : i32
    %c0_i32_1 = arith.constant 0 : i32
    return %arg0, %c0_i32, %c0_i32_0 : i32, i32, i32
  }
  func.func @transform_11(%arg0: i32) -> (i32, i32, i32) {
    %c0_i32 = arith.constant 0 : i32
    %c0_i32_0 = arith.constant 0 : i32
    %c0_i32_1 = arith.constant 0 : i32
    return %arg0, %c0_i32, %c0_i32_0 : i32, i32, i32
  }
  func.func @transform_12(%arg0: i32) -> (i32, i32, i32) {
    %c0_i32 = arith.constant 0 : i32
    %c0_i32_0 = arith.constant 0 : i32
    %c0_i32_1 = arith.constant 0 : i32
    return %arg0, %c0_i32, %c0_i32_0 : i32, i32, i32
  }
  func.func @transform_13(%arg0: i32) -> (i32, i32, i32) {
    %c0_i32 = arith.constant 0 : i32
    %c0_i32_0 = arith.constant 0 : i32
    %c0_i32_1 = arith.constant 0 : i32
    return %arg0, %c0_i32, %c0_i32_0 : i32, i32, i32
  }
  func.func @transform_14(%arg0: i32) -> (i32, i32, i32) {
    %c0_i32 = arith.constant 0 : i32
    %c0_i32_0 = arith.constant 0 : i32
    %c0_i32_1 = arith.constant 0 : i32
    return %arg0, %c0_i32, %c0_i32_0 : i32, i32, i32
  }
  func.func @transform_15(%arg0: i32) -> (i32, i32, i32) {
    %c0_i32 = arith.constant 0 : i32
    %c0_i32_0 = arith.constant 0 : i32
    %c0_i32_1 = arith.constant 0 : i32
    return %arg0, %c0_i32, %c0_i32_0 : i32, i32, i32
  }
  func.func @transform_16(%arg0: i32) -> (i32, i32, i32) {
    %c0_i32 = arith.constant 0 : i32
    %c0_i32_0 = arith.constant 0 : i32
    %c0_i32_1 = arith.constant 0 : i32
    return %arg0, %c0_i32, %c0_i32_0 : i32, i32, i32
  }
  func.func @transform_17(%arg0: i32) -> (i32, i32) {
    %c0_i32 = arith.constant 0 : i32
    %c0_i32_0 = arith.constant 0 : i32
    %c0_i32_1 = arith.constant 0 : i32
    return %c0_i32, %c0_i32_0 : i32, i32
  }
}

</mosaic_0001>

<bundles_post_ra>
// kernel: graphormer_forward.1
= control target key start
LH: loop header
LB: loop body
LE: loop exit
PB: predicated region body
PF: predicated region fallthrough
CT: control target
= control target key end

     0   :  { %s8412_s0 = inlined_call_operand.vmem [shape: f32[8,32], index: 0, kind: input, shape index: {}]   ;;  %s8413_s1 = inlined_call_operand.vmem [shape: bf16[2,8,32,4], index: 1, kind: input, shape index: {}]   ;;  %s8414_s2 = inlined_call_operand.vmem [shape: f32[2,8,1,4], index: 2, kind: input, shape index: {}]   ;;  %s8415_s3 = inlined_call_operand.vmem [shape: bf16[2,8,32,4], index: 3, kind: input, shape index: {}]   ;;  %s8416_s4 = inlined_call_operand.vmem [shape: f32[2,8,1,4], index: 4, kind: input, shape index: {}]   ;;  %s8417_s5 = inlined_call_operand.vmem [shape: bf16[2,8,32,4], index: 5, kind: input, shape index: {}]   ;;  %s8418_s6 = inlined_call_operand.vmem [shape: f32[2,8,1,4], index: 6, kind: input, shape index: {}]   ;;  %s8419_s7 = inlined_call_operand.vmem [shape: bf16[2,8,4,32], index: 7, kind: input, shape index: {}]   ;;  %s8420_s8 = inlined_call_operand.vmem [shape: f32[2,1,32], index: 8, kind: input, shape index: {}]   ;;  %s8421_s9 = inlined_call_operand.vmem [shape: f32[2,1,32], index: 9, kind: input, shape index: {}]   ;;  %s8422_s10 = inlined_call_operand.vmem [shape: f32[2,1,32], index: 10, kind: input, shape index: {}]   ;;  %s8423_s11 = inlined_call_operand.vmem [shape: bf16[2,32,2048], index: 11, kind: input, shape index: {}]   ;;  %s8424_s12 = inlined_call_operand.vmem [shape: f32[2,1,2048], index: 12, kind: input, shape index: {}]   ;;  %s8425_s13 = inlined_call_operand.vmem [shape: bf16[2,2048,32], index: 13, kind: input, shape index: {}]   ;;  %s8426_s14 = inlined_call_operand.vmem [shape: f32[2,1,32], index: 14, kind: input, shape index: {}]   ;;  %s8427_s15 = inlined_call_operand.vmem [shape: f32[2,1,32], index: 15, kind: input, shape index: {}]   ;;  %s8428_s16 = inlined_call_operand.vmem [shape: f32[2,1,32], index: 16, kind: input, shape index: {}]   ;;  %s8429_s17 = inlined_call_operand.hbm [shape: f32[8,32], index: 17, kind: output, shape index: {}]  }
   0x1   :  { %8436 = sst [smem:[#allocation11_spill]] %s8412_s0 }
   0x2   :  { %8437 = sst [smem:[#allocation12_spill]] %s8413_s1 }
   0x3   :  { %8438 = sst [smem:[#allocation13_spill]] %s8414_s2 }
   0x4   :  { %8439 = sst [smem:[#allocation14_spill]] %s8415_s3 }
   0x5   :  { %8440 = sst [smem:[#allocation15_spill]] %s8416_s4 }
   0x6   :  { %8441 = sst [smem:[#allocation16_spill]] %s8417_s5 }
   0x7   :  { %8442 = sst [smem:[#allocation17_spill]] %s8418_s6 }
   0x8   :  { %8443 = sst [smem:[#allocation18_spill]] %s8419_s7 }
   0x9   :  { %8444 = sst [smem:[#allocation19_spill]] %s8423_s11 }
   0xa   :  { %8445 = sst [smem:[#allocation20_spill]] %s8429_s17 }
   0xb   :  { %22 = vsyncpa [#allocation4], 0  ;;  %s7575_s24 = smov 0  }
   0xc LB: > { %8446 = sst [smem:[#allocation6_spill]] %s7479_s24  ;;  %s7581_s25 = sadd.s32 4294967295, %s7479_s24   ;;  %s7479_s24 = sphi %s7575_s24, %s28_s24  }
   0xd   : > { %8447 = sst [smem:[#allocation7_spill]] %s7581_s25  ;;  %p6268_p0 = scmp.ge.s32.totalorder %s7479_s24, 1 }
   0xe   : > { %p617_p1 = scmp.lt.s32.totalorder %s7479_s24, 3 }
  0x10   : > { %p618_p2 = pnand %p6268_p0, %p617_p1 }
  0x12   : > { %621 = sbr.rel (%p618_p2) target bundleno = 2351 (0x92f), region = 88 }
  0x17   : > { %p723_p3 = scmp.lt.s32.totalorder %s7581_s25, 1  ;;  %s8448_s30 = sld [smem:[#allocation12_spill]] }
  0x18   : > { %s8449_s2 = sld [smem:[#allocation13_spill]] }
  0x19   : > { %s7587_s26 = scalar_select %p723_p3, %s7581_s25, 1 }
  0x1a   : > { %s8451_s3 = sld [smem:[#allocation14_spill]] }
  0x1b   : > { %s6592_s27 = sshll.u32 %s7587_s26, 7  ;;  %s6271_s28 = sshll.u32 %s7587_s26, 3 }
  0x1c   : > { %s8453_s4 = sld [smem:[#allocation15_spill]]  ;;  %s6595_s21 = sshll.u32 %s7587_s26, 4 }
  0x1d   : > { %s7594_s18 = scalar_lea.vmem %s8448_s30, %s6592_s27  ;;  %s8455_s5 = sld [smem:[#allocation16_spill]] }
  0x1e   : > { %s7599_s20 = scalar_lea.vmem %s8449_s2, %s6271_s28  ;;  %s8456_s6 = sld [smem:[#allocation17_spill]] }
  0x1f   : > { %8450 = sst [smem:[#allocation8_spill]] %s7599_s20  ;;  %s6597_s17 = sshll.u32 %s7587_s26, 10 }
  0x20   : > { %s7604_s23 = scalar_lea.vmem %s8451_s3, %s6592_s27  ;;  %s8457_s7 = sld [smem:[#allocation18_spill]] }
  0x21   : > { %8452 = sst [smem:[#allocation9_spill]] %s7604_s23  ;;  %s7648_s23 = scalar_lea.vmem %s8424_s12, %s6595_s21 }
  0x22   : > { %s7609_s25 = scalar_lea.vmem %s8453_s4, %s6271_s28  ;;  %s8458_s11 = sld [smem:[#allocation19_spill]] }
  0x23   : > { %8454 = sst [smem:[#allocation10_spill]] %s7609_s25  ;;  %s7614_s30 = scalar_lea.vmem %s8455_s5, %s6592_s27 }
  0x24   : > { %s7619_s2 = scalar_lea.vmem %s8456_s6, %s6271_s28  ;;  %s6596_s28 = sshll.u32 %s7587_s26, 8 }
  0x25   : > { %s780_s4 = scalar_lea.vmem %s8426_s14, %s7587_s26  ;;  %s7658_s29 = scalar_lea.vmem %s8425_s13, %s6597_s17 }
  0x26   : > { %s7629_s24 = scalar_lea.vmem %s8457_s7, %s6595_s21  ;;  %s783_s5 = scalar_lea.vmem %s8427_s15, %s7587_s26 }
  0x27   : > { %s786_s3 = scalar_lea.vmem %s8428_s16, %s7587_s26  ;;  %s8459_s21 = sld [smem:[#allocation7_spill]] }
  0x28   : > { %s7643_s6 = scalar_lea.vmem %s8458_s11, %s6596_s28 }
  0x2d   : > { %p6285_p4 = scmp.ne.s32.totalorder %s8459_s21, 0 }
  0x2e   : > { %s8460_s7 = sld [smem:[#allocation11_spill]] (!%p6285_p4) }
  0x2f   : > { %791 = sbr.rel (%p6285_p4) target bundleno = 54 (0x36), region = 92 }
  0x34   : > { %v792_v0 = vld [vmem:[%s8460_s7] sm:$0xff]  ;;  %vm793_vm0 = vcmask 261120  }
  0x35   : > { %794 = vst.msk [vmem:[#allocation2] sm:$0xff] %vm793_vm0, %v792_v0 }
  0x36 PF: > { %v7232_v1 = vld [vmem:[%s7594_s18 + $0x8] sm:$0xff]   ;;  %v7481_v2 = vmov 0.0   ;;  %v7233_v3 = vld [vmem:[%s7594_s18 + $0x18] sm:$0xff]   ;;  %v7234_v4 = vld [vmem:[%s7594_s18] sm:$0xff]   ;;  %vm7482_vm1 = vmmov 0   ;;  %vm897_vm2 = vcmask 261120   ;;  %s8465_s17 = scalar_lea.vmem %s8421_s9, %s7587_s26  ;;  %s8466_s28 = scalar_lea.vmem %s8422_s10, %s7587_s26 }
  0x37   : > { %6894 = vmatprep.subr.bf16.mxu0 %v7481_v2  ;;  %6902 = vmatprep.subr.bf16.mxu1 %v7481_v2  ;;  %v7235_v5 = vld [vmem:[%s7594_s18 + $0x10] sm:$0xff]   ;;  %v7236_v8 = vld [vmem:[%s7594_s18 + $0x28] sm:$0xff]   ;;  %v7237_v9 = vld [vmem:[%s7594_s18 + $0x38] sm:$0xff]   ;;  %s8461_s11 = sld [smem:[#allocation9_spill]]  ;;  %vm2313_vm3 = vcmask 31744   ;;  %vm2922_vm4 = vcmask 64512  }
  0x38   : > { %6895 = vmatpush3.bf16.msra.mxu0 %v7232_v1  ;;  %6898 = vmatprep.mubr.msk.bf16.mxu0 %vm7482_vm1, %v7481_v2  ;;  %v7238_v10 = vld [vmem:[%s7594_s18 + $0x20] sm:$0xff]   ;;  %v7239_v11 = vld [vmem:[%s7594_s18 + $0x30] sm:$0xff]   ;;  %v7240_v12 = vld [vmem:[%s7594_s18 + $0x48] sm:$0xff]   ;;  %s8463_s20 = sld [smem:[#allocation8_spill]]  ;;  %vm3614_vm5 = vcmask 1041408   ;;  %s7484_s7 = smov [#allocation3]  }
  0x39   : > { %6903 = vmatpush3.bf16.msra.mxu1 %v7233_v3  ;;  %6896 = vmatprep.subr.bf16.mxu0 %v7481_v2  ;;  %v7241_v13 = vld [vmem:[%s7594_s18 + $0x58] sm:$0xff]   ;;  %v7242_v14 = vld [vmem:[%s7594_s18 + $0x40] sm:$0xff]   ;;  %v7243_v15 = vld [vmem:[%s7594_s18 + $0x50] sm:$0xff]  }
  0x3a   : > { %6904 = vmatprep.subr.bf16.mxu1 %v7481_v2  ;;  %6906 = vmatprep.mubr.msk.bf16.mxu1 %vm7482_vm1, %v7481_v2  ;;  %v7244_v16 = vld [vmem:[%s7594_s18 + $0x68] sm:$0xff]   ;;  %v7245_v17 = vld [vmem:[%s7594_s18 + $0x78] sm:$0xff]   ;;  %v7246_v18 = vld [vmem:[%s7594_s18 + $0x60] sm:$0xff]  }
  0x3b   : > { %v7247_v19 = vld [vmem:[%s7594_s18 + $0x70] sm:$0xff]   ;;  %v7264_v36 = vld [vmem:[%s7614_s30 + $0x8] sm:$0xff]   ;;  %v7265_v37 = vld [vmem:[%s7614_s30 + $0x18] sm:$0xff]   ;;  %s8462_s18 = sld [smem:[#allocation10_spill]] }
  0x3c   : > { %v795_v6 = vld [vmem:[#allocation2] sm:$0xff]  ;;  %6897 = vmatpush3.bf16.msra.mxu0 %v7234_v4  ;;  %v7267_v39 = vld [vmem:[%s7614_s30 + $0x10] sm:$0xff]   ;;  %v7268_v40 = vld [vmem:[%s7614_s30 + $0x28] sm:$0xff]  }
  0x3d   : > { %v7684_v7 = vpack.c.bf16 %v795_v6, %v795_v6  ;;  %6905 = vmatpush3.bf16.msra.mxu1 %v7235_v5  ;;  %6910 = vmatprep.subr.bf16.mxu0 %v7481_v2  ;;  %v7248_v20 = vld [vmem:[%s8461_s11 + $0x8] sm:$0xff]   ;;  %v7249_v21 = vld [vmem:[%s8461_s11 + $0x18] sm:$0xff]   ;;  %v7250_v22 = vld [vmem:[%s8461_s11] sm:$0xff]  }
  0x3e   : > { %6918 = vmatprep.subr.bf16.mxu1 %v7481_v2  ;;  %v7251_v23 = vld [vmem:[%s8461_s11 + $0x10] sm:$0xff]   ;;  %v7252_v24 = vld [vmem:[%s8461_s11 + $0x28] sm:$0xff]   ;;  %v7253_v25 = vld [vmem:[%s8461_s11 + $0x38] sm:$0xff]  }
  0x3f   : > { %6899 = vmatmul.mubr.msk.bf16.vlgmr.msra.gmra.mxu0 %vm897_vm2, %v7684_v7  ;;  %v7254_v26 = vld [vmem:[%s8461_s11 + $0x20] sm:$0xff]   ;;  %v7255_v27 = vld [vmem:[%s8461_s11 + $0x30] sm:$0xff]   ;;  %v7256_v28 = vld [vmem:[%s8461_s11 + $0x48] sm:$0xff]  }
  0x40   : > { %6907 = vmatmul.mubr.msk.bf16.vlgmr.msra.gmra.mxu1 %vm897_vm2, %v7684_v7  ;;  %6911 = vmatpush3.bf16.msra.mxu0 %v7236_v8  ;;  %v7257_v29 = vld [vmem:[%s8461_s11 + $0x58] sm:$0xff]   ;;  %v7258_v30 = vld [vmem:[%s8461_s11 + $0x40] sm:$0xff]   ;;  %v7259_v31 = vld [vmem:[%s8461_s11 + $0x50] sm:$0xff]  }
  0x41   : > { %6919 = vmatpush3.bf16.msra.mxu1 %v7237_v9  ;;  %6912 = vmatprep.subr.bf16.mxu0 %v7481_v2  ;;  %v7260_v32 = vld [vmem:[%s8461_s11 + $0x68] sm:$0xff]   ;;  %v7261_v33 = vld [vmem:[%s8461_s11 + $0x78] sm:$0xff]   ;;  %v7262_v34 = vld [vmem:[%s8461_s11 + $0x60] sm:$0xff]  }
  0x42   : > { %6920 = vmatprep.subr.bf16.mxu1 %v7481_v2  ;;  %6914 = vmatprep.mubr.msk.bf16.mxu0 %vm7482_vm1, %v7481_v2  ;;  %v7263_v35 = vld [vmem:[%s8461_s11 + $0x70] sm:$0xff]   ;;  %v7266_v38 = vld [vmem:[%s7614_s30] sm:$0xff]   ;;  %v7269_v41 = vld [vmem:[%s7614_s30 + $0x38] sm:$0xff]   ;;  %s6064_s11 = sshll.u32 %s7484_s7, 4  ;;  %s6065_s11 = int_to_ptr.vmem [resolvable:$true] %s6064_s11 }
  0x43   : > { %6922 = vmatprep.mubr.msk.bf16.mxu1 %vm7482_vm1, %v7481_v2  ;;  %v7270_v42 = vld [vmem:[%s7614_s30 + $0x20] sm:$0xff]   ;;  %v7271_v43 = vld [vmem:[%s7614_s30 + $0x30] sm:$0xff]   ;;  %v7272_v44 = vld [vmem:[%s7614_s30 + $0x48] sm:$0xff]   ;;  %p7452_p9 = scmp.lt.s32.totalorder %s6065_s11, %s6065_s11 }
  0x44   : > { %6913 = vmatpush3.bf16.msra.mxu0 %v7238_v10  ;;  %v7273_v45 = vld [vmem:[%s7614_s30 + $0x58] sm:$0xff]   ;;  %v7274_v46 = vld [vmem:[%s7614_s30 + $0x40] sm:$0xff]   ;;  %v7275_v47 = vld [vmem:[%s7614_s30 + $0x50] sm:$0xff]  }
  0x45   : > { %6921 = vmatpush3.bf16.msra.mxu1 %v7239_v11  ;;  %6926 = vmatprep.subr.bf16.mxu0 %v7481_v2  ;;  %v7276_v48 = vld [vmem:[%s7614_s30 + $0x68] sm:$0xff]   ;;  %v7277_v49 = vld [vmem:[%s7614_s30 + $0x78] sm:$0xff]   ;;  %v7278_v50 = vld [vmem:[%s7614_s30 + $0x60] sm:$0xff]  }
  0x46   : > { %6934 = vmatprep.subr.bf16.mxu1 %v7481_v2  ;;  %v7279_v51 = vld [vmem:[%s7614_s30 + $0x70] sm:$0xff]  }
  0x47   : > { %6915 = vmatmul.mubr.msk.bf16.vlgmr.msra.gmra.mxu0 %vm897_vm2, %v7684_v7 }
  0x48   : > { %6923 = vmatmul.mubr.msk.bf16.vlgmr.msra.gmra.mxu1 %vm897_vm2, %v7684_v7  ;;  %6927 = vmatpush3.bf16.msra.mxu0 %v7240_v12 }
  0x49   : > { %6935 = vmatpush3.bf16.msra.mxu1 %v7241_v13  ;;  %6928 = vmatprep.subr.bf16.mxu0 %v7481_v2 }
  0x4a   : > { %6936 = vmatprep.subr.bf16.mxu1 %v7481_v2  ;;  %6930 = vmatprep.mubr.msk.bf16.mxu0 %vm7482_vm1, %v7481_v2 }
  0x4b   : > { %6938 = vmatprep.mubr.msk.bf16.mxu1 %vm7482_vm1, %v7481_v2 }
  0x4c   : > { %6929 = vmatpush3.bf16.msra.mxu0 %v7242_v14 }
  0x4d   : > { %6937 = vmatpush3.bf16.msra.mxu1 %v7243_v15  ;;  %6942 = vmatprep.subr.bf16.mxu0 %v7481_v2 }
  0x4e   : > { %6950 = vmatprep.subr.bf16.mxu1 %v7481_v2 }
  0x4f   : > { %6931 = vmatmul.mubr.msk.bf16.vlgmr.msra.gmra.mxu0 %vm897_vm2, %v7684_v7 }
  0x50   : > { %6939 = vmatmul.mubr.msk.bf16.vlgmr.msra.gmra.mxu1 %vm897_vm2, %v7684_v7  ;;  %6943 = vmatpush3.bf16.msra.mxu0 %v7244_v16 }
  0x51   : > { %6951 = vmatpush3.bf16.msra.mxu1 %v7245_v17  ;;  %6944 = vmatprep.subr.bf16.mxu0 %v7481_v2 }
  0x52   : > { %6952 = vmatprep.subr.bf16.mxu1 %v7481_v2  ;;  %6946 = vmatprep.mubr.msk.bf16.mxu0 %vm7482_vm1, %v7481_v2 }
  0x53   : > { %6954 = vmatprep.mubr.msk.bf16.mxu1 %vm7482_vm1, %v7481_v2 }
  0x54   : > { %6945 = vmatpush3.bf16.msra.mxu0 %v7246_v18 }
  0x55   : > { %6953 = vmatpush3.bf16.msra.mxu1 %v7247_v19  ;;  %6958 = vmatprep.subr.bf16.mxu0 %v7481_v2 }
  0x56   : > { %6966 = vmatprep.subr.bf16.mxu1 %v7481_v2 }
  0x57   : > { %6947 = vmatmul.mubr.msk.bf16.vlgmr.msra.gmra.mxu0 %vm897_vm2, %v7684_v7 }
  0x58   : > { %6955 = vmatmul.mubr.msk.bf16.vlgmr.msra.gmra.mxu1 %vm897_vm2, %v7684_v7  ;;  %6959 = vmatpush3.bf16.msra.mxu0 %v7248_v20  ;;  %v6318_v20 = vld [vmem:[%s8462_s18] ss:$0 sm:$0xff] }
  0x59   : > { %6967 = vmatpush3.bf16.msra.mxu1 %v7249_v21  ;;  %6960 = vmatprep.subr.bf16.mxu0 %v7481_v2 }
  0x5a   : > { %6968 = vmatprep.subr.bf16.mxu1 %v7481_v2  ;;  %6962 = vmatprep.mubr.msk.bf16.mxu0 %vm7482_vm1, %v7481_v2 }
  0x5b   : > { %6970 = vmatprep.mubr.msk.bf16.mxu1 %vm7482_vm1, %v7481_v2 }
  0x5c   : > { %6961 = vmatpush3.bf16.msra.mxu0 %v7250_v22  ;;  %v6319_v22 = vld [vmem:[%s8462_s18 + $0x1] ss:$0 sm:$0xff] }
  0x5d   : > { %6969 = vmatpush3.bf16.msra.mxu1 %v7251_v23  ;;  %6974 = vmatprep.subr.bf16.mxu0 %v7481_v2 }
  0x5e   : > { %6982 = vmatprep.subr.bf16.mxu1 %v7481_v2 }
  0x5f   : > { %6963 = vmatmul.mubr.msk.bf16.vlgmr.msra.gmra.mxu0 %vm897_vm2, %v7684_v7 }
  0x60   : > { %6971 = vmatmul.mubr.msk.bf16.vlgmr.msra.gmra.mxu1 %vm897_vm2, %v7684_v7  ;;  %6975 = vmatpush3.bf16.msra.mxu0 %v7252_v24  ;;  %v6286_v24 = vld [vmem:[%s8463_s20] ss:$0 sm:$0xff] }
  0x61   : > { %6983 = vmatpush3.bf16.msra.mxu1 %v7253_v25  ;;  %6976 = vmatprep.subr.bf16.mxu0 %v7481_v2 }
  0x62   : > { %6984 = vmatprep.subr.bf16.mxu1 %v7481_v2  ;;  %6978 = vmatprep.mubr.msk.bf16.mxu0 %vm7482_vm1, %v7481_v2 }
  0x63   : > { %6986 = vmatprep.mubr.msk.bf16.mxu1 %vm7482_vm1, %v7481_v2 }
  0x64   : > { %6977 = vmatpush3.bf16.msra.mxu0 %v7254_v26 }
  0x65   : > { %6985 = vmatpush3.bf16.msra.mxu1 %v7255_v27  ;;  %6990 = vmatprep.subr.bf16.mxu0 %v7481_v2  ;;  %v6287_v27 = vld [vmem:[%s8463_s20 + $0x1] ss:$0 sm:$0xff] }
  0x66   : > { %6998 = vmatprep.subr.bf16.mxu1 %v7481_v2 }
  0x67   : > { %6979 = vmatmul.mubr.msk.bf16.vlgmr.msra.gmra.mxu0 %vm897_vm2, %v7684_v7 }
  0x68   : > { %6987 = vmatmul.mubr.msk.bf16.vlgmr.msra.gmra.mxu1 %vm897_vm2, %v7684_v7  ;;  %6991 = vmatpush3.bf16.msra.mxu0 %v7256_v28 }
  0x69   : > { %6999 = vmatpush3.bf16.msra.mxu1 %v7257_v29  ;;  %6992 = vmatprep.subr.bf16.mxu0 %v7481_v2 }
  0x6a   : > { %7000 = vmatprep.subr.bf16.mxu1 %v7481_v2  ;;  %6994 = vmatprep.mubr.msk.bf16.mxu0 %vm7482_vm1, %v7481_v2 }
  0x6b   : > { %7002 = vmatprep.mubr.msk.bf16.mxu1 %vm7482_vm1, %v7481_v2 }
  0x6c   : > { %6993 = vmatpush3.bf16.msra.mxu0 %v7258_v30 }
  0x6d   : > { %7001 = vmatpush3.bf16.msra.mxu1 %v7259_v31  ;;  %7006 = vmatprep.subr.bf16.mxu0 %v7481_v2 }
  0x6e   : > { %7014 = vmatprep.subr.bf16.mxu1 %v7481_v2 }
  0x6f   : > { %6995 = vmatmul.mubr.msk.bf16.vlgmr.msra.gmra.mxu0 %vm897_vm2, %v7684_v7 }
  0x70   : > { %7003 = vmatmul.mubr.msk.bf16.vlgmr.msra.gmra.mxu1 %vm897_vm2, %v7684_v7  ;;  %7007 = vmatpush3.bf16.msra.mxu0 %v7260_v32 }
  0x71   : > { %7015 = vmatpush3.bf16.msra.mxu1 %v7261_v33  ;;  %7008 = vmatprep.subr.bf16.mxu0 %v7481_v2 }
  0x72   : > { %7016 = vmatprep.subr.bf16.mxu1 %v7481_v2  ;;  %7010 = vmatprep.mubr.msk.bf16.mxu0 %vm7482_vm1, %v7481_v2 }
  0x73   : > { %7018 = vmatprep.mubr.msk.bf16.mxu1 %vm7482_vm1, %v7481_v2 }
  0x74   : > { %7009 = vmatpush3.bf16.msra.mxu0 %v7262_v34 }
  0x75   : > { %7017 = vmatpush3.bf16.msra.mxu1 %v7263_v35  ;;  %7022 = vmatprep.subr.bf16.mxu0 %v7481_v2 }
  0x76   : > { %7030 = vmatprep.subr.bf16.mxu1 %v7481_v2 }
  0x77   : > { %7011 = vmatmul.mubr.msk.bf16.vlgmr.msra.gmra.mxu0 %vm897_vm2, %v7684_v7 }
  0x78   : > { %7019 = vmatmul.mubr.msk.bf16.vlgmr.msra.gmra.mxu1 %vm897_vm2, %v7684_v7  ;;  %7023 = vmatpush3.bf16.msra.mxu0 %v7264_v36  ;;  %v6320_v36 = vld [vmem:[%s8462_s18 + $0x2] ss:$0 sm:$0xff] }
  0x79   : > { %7031 = vmatpush3.bf16.msra.mxu1 %v7265_v37  ;;  %7024 = vmatprep.subr.bf16.mxu0 %v7481_v2 }
  0x7a   : > { %7032 = vmatprep.subr.bf16.mxu1 %v7481_v2  ;;  %7026 = vmatprep.mubr.msk.bf16.mxu0 %vm7482_vm1, %v7481_v2 }
  0x7b   : > { %7034 = vmatprep.mubr.msk.bf16.mxu1 %vm7482_vm1, %v7481_v2 }
  0x7c   : > { %7025 = vmatpush3.bf16.msra.mxu0 %v7266_v38  ;;  %v6321_v38 = vld [vmem:[%s8462_s18 + $0x3] ss:$0 sm:$0xff] }
  0x7d   : > { %7038 = vmatprep.subr.bf16.mxu0 %v7481_v2  ;;  %7033 = vmatpush3.bf16.msra.mxu1 %v7267_v39 }
  0x7e   : > { %7046 = vmatprep.subr.bf16.mxu1 %v7481_v2 }
  0x7f   : > { %7027 = vmatmul.mubr.msk.bf16.vlgmr.msra.gmra.mxu0 %vm897_vm2, %v7684_v7 }
  0x80   : > { %7039 = vmatpush3.bf16.msra.mxu0 %v7268_v40  ;;  %7042 = vmatprep.mubr.msk.bf16.mxu0 %vm7482_vm1, %v7481_v2  ;;  %v6288_v40 = vld [vmem:[%s8463_s20 + $0x2] ss:$0 sm:$0xff] }
  0x81   : > { %7040 = vmatprep.subr.bf16.mxu0 %v7481_v2  ;;  %7035 = vmatmul.mubr.msk.bf16.vlgmr.msra.gmra.mxu1 %vm897_vm2, %v7684_v7 }
  0x82   : > { %7047 = vmatpush3.bf16.msra.mxu1 %v7269_v41  ;;  %7050 = vmatprep.mubr.msk.bf16.mxu1 %vm7482_vm1, %v7481_v2 }
  0x83   : > { %7048 = vmatprep.subr.bf16.mxu1 %v7481_v2 }
  0x84   : > { %7041 = vmatpush3.bf16.msra.mxu0 %v7270_v42 }
  0x85   : > { %7054 = vmatprep.subr.bf16.mxu0 %v7481_v2 }
  0x86   : > { %7049 = vmatpush3.bf16.msra.mxu1 %v7271_v43  ;;  %v6289_v43 = vld [vmem:[%s8463_s20 + $0x3] ss:$0 sm:$0xff] }
  0x87   : > { %7043 = vmatmul.mubr.msk.bf16.vlgmr.msra.gmra.mxu0 %vm897_vm2, %v7684_v7  ;;  %7062 = vmatprep.subr.bf16.mxu1 %v7481_v2 }
  0x88   : > { %7055 = vmatpush3.bf16.msra.mxu0 %v7272_v44  ;;  %7058 = vmatprep.mubr.msk.bf16.mxu0 %vm7482_vm1, %v7481_v2 }
  0x89   : > { %7056 = vmatprep.subr.bf16.mxu0 %v7481_v2  ;;  %7051 = vmatmul.mubr.msk.bf16.vlgmr.msra.gmra.mxu1 %vm897_vm2, %v7684_v7 }
  0x8a   : > { %7063 = vmatpush3.bf16.msra.mxu1 %v7273_v45  ;;  %7066 = vmatprep.mubr.msk.bf16.mxu1 %vm7482_vm1, %v7481_v2 }
  0x8b   : > { %7064 = vmatprep.subr.bf16.mxu1 %v7481_v2 }
  0x8c   : > { %7057 = vmatpush3.bf16.msra.mxu0 %v7274_v46 }
  0x8d   : > { %7070 = vmatprep.subr.bf16.mxu0 %v7481_v2 }
  0x8e   : > { %7065 = vmatpush3.bf16.msra.mxu1 %v7275_v47 }
  0x8f   : > { %7059 = vmatmul.mubr.msk.bf16.vlgmr.msra.gmra.mxu0 %vm897_vm2, %v7684_v7  ;;  %7078 = vmatprep.subr.bf16.mxu1 %v7481_v2 }
  0x90   : > { %7071 = vmatpush3.bf16.msra.mxu0 %v7276_v48  ;;  %7074 = vmatprep.mubr.msk.bf16.mxu0 %vm7482_vm1, %v7481_v2 }
  0x91   : > { %7072 = vmatprep.subr.bf16.mxu0 %v7481_v2  ;;  %7067 = vmatmul.mubr.msk.bf16.vlgmr.msra.gmra.mxu1 %vm897_vm2, %v7684_v7 }
  0x92   : > { %7079 = vmatpush3.bf16.msra.mxu1 %v7277_v49  ;;  %7082 = vmatprep.mubr.msk.bf16.mxu1 %vm7482_vm1, %v7481_v2 }
  0x93   : > { %7080 = vmatprep.subr.bf16.mxu1 %v7481_v2 }
  0x94   : > { %7073 = vmatpush3.bf16.msra.mxu0 %v7278_v50 }
  0x95   : > { %7086 = vmatprep.subr.mxu0 %v7481_v2 }
  0x96   : > { %7081 = vmatpush3.bf16.msra.mxu1 %v7279_v51 }
  0x97   : > { %7075 = vmatmul.mubr.msk.bf16.vlgmr.msra.gmra.mxu0 %vm897_vm2, %v7684_v7  ;;  %7091 = vmatprep.subr.mxu1 %v7481_v2 }
  0x98   : > { %7088 = vmatprep.mubr.msk.f32.mxu0 %vm7482_vm1, %v7481_v2 }
  0x99   : > { %7083 = vmatmul.mubr.msk.bf16.vlgmr.msra.gmra.mxu1 %vm897_vm2, %v7684_v7 }
  0x9a   : > { %7093 = vmatprep.mubr.msk.f32.mxu1 %vm7482_vm1, %v7481_v2 }
  0xff   : > { %v935_v52 = vpop.f32.mrf.mxu0 }
 0x100   : > { %v987_v53 = vpop.f32.mrf.mxu1  ;;  %v936_v31 = vadd.f32 %v6286_v24, %v935_v52  ;;  %v6322_v52 = vld [vmem:[%s8462_s18 + $0x4] ss:$0 sm:$0xff]  ;;  %v6350_v24 = vld [vmem:[%s7619_s2] ss:$0 sm:$0xff] }
 0x101   : > { %v6900_v54 = vpop.f32.mrf.mxu0  ;;  %v988_v33 = vadd.f32 %v6287_v27, %v987_v53 }
 0x102   : > { %v6908_v55 = vpop.f32.mrf.mxu1  ;;  %v6323_v54 = vld [vmem:[%s8462_s18 + $0x5] ss:$0 sm:$0xff] }
 0x103   : > { %v938_v56 = vpop.f32.mrf.mxu0 }
 0x104   : > { %v990_v57 = vpop.f32.mrf.mxu1  ;;  %v6290_v56 = vld [vmem:[%s8463_s20 + $0x4] ss:$0 sm:$0xff] }
 0x105   : > { %v6901_v58 = vpop.f32.mrf.mxu0 }
 0x106   : > { %v6909_v59 = vpop.f32.mrf.mxu1 }
 0x107   : > { %v1039_v60 = vpop.f32.mrf.mxu0  ;;  %v6291_v59 = vld [vmem:[%s8463_s20 + $0x5] ss:$0 sm:$0xff] }
 0x108   : > { %v7872_v61 = vpop.f32.mrf.mxu1  ;;  %v1040_v47 = vadd.f32 %v6288_v40, %v1039_v60 }
 0x109   : > { %v6916_v62 = vpop.f32.mrf.mxu0  ;;  %v1092_v49 = vadd.f32 %v6289_v43, %v7872_v61 }
 0x10a   : > { %v6924_v63 = vpop.f32.mrf.mxu1 }
 0x10b   : > { %v1042_v0 = vpop.f32.mrf.mxu0 }
 0x10c   : > { %v1094_v1 = vpop.f32.mrf.mxu1 }
 0x10d   : > { %v6917_v3 = vpop.f32.mrf.mxu0 }
 0x10e   : > { %v6925_v4 = vpop.f32.mrf.mxu1 }
 0x10f   : > { %v7874_v5 = vpop.f32.mrf.mxu0 }
 0x110   : > { %v7876_v6 = vpop.f32.mrf.mxu1  ;;  %v1144_v63 = vadd.f32 %v6290_v56, %v7874_v5  ;;  %v6325_v5 = vld [vmem:[%s8462_s18 + $0x7] ss:$0 sm:$0xff] }
 0x111   : > { %v6932_v7 = vpop.f32.mrf.mxu0  ;;  %v1196_v1 = vadd.f32 %v6291_v59, %v7876_v6 }
 0x112   : > { %v6940_v8 = vpop.f32.mrf.mxu1  ;;  %v6324_v7 = vld [vmem:[%s8462_s18 + $0x6] ss:$0 sm:$0xff]  ;;  %s7445_s18 = scalar_lea.vmem %s6065_s11, 128 }
 0x113   : > { %v1146_v9 = vpop.f32.mrf.mxu0  ;;  %p7446_p6 = scmp.ne.s32.totalorder %s6065_s11, %s7445_s18  ;;  %p7453_p10 = scmp.lt.s32.totalorder %s7445_s18, %s7445_s18 }
 0x114   : > { %v1198_v10 = vpop.f32.mrf.mxu1 }
 0x115   : > { %v6933_v11 = vpop.f32.mrf.mxu0  ;;  %v6292_v10 = vld [vmem:[%s8463_s20 + $0x6] ss:$0 sm:$0xff]  ;;  %p7454_p11 = por %p7453_p10, %p7452_p9 }
 0x116   : > { %v6941_v12 = vpop.f32.mrf.mxu1 }
 0x117   : > { %v7878_v13 = vpop.f32.mrf.mxu0  ;;  %v6293_v12 = vld [vmem:[%s8463_s20 + $0x7] ss:$0 sm:$0xff] }
 0x118   : > { %v7880_v14 = vpop.f32.mrf.mxu1 }
 0x119   : > { %v6948_v15 = vpop.f32.mrf.mxu0 }
 0x11a   : > { %v6956_v16 = vpop.f32.mrf.mxu1 }
 0x11b   : > { %v1250_v17 = vpop.f32.mrf.mxu0 }
 0x11c   : > { %v1302_v18 = vpop.f32.mrf.mxu1 }
 0x11d   : > { %v6949_v19 = vpop.f32.mrf.mxu0  ;;  %v1248_v18 = vadd.f32 %v6292_v10, %v7878_v13 }
 0x11e   : > { %v6957_v21 = vpop.f32.mrf.mxu1 }
 0x11f   : > { %v1439_v23 = vpop.f32.mrf.mxu0 }
 0x120   : > { %v1440_v25 = vadd.f32 %v6318_v20, %v1439_v23  ;;  %v1491_v26 = vpop.f32.mrf.mxu1  ;;  %v1300_v20 = vadd.f32 %v6293_v12, %v7880_v14 }
 0x121   : > { %v1492_v28 = vadd.f32 %v6319_v22, %v1491_v26  ;;  %v6964_v29 = vpop.f32.mrf.mxu0  ;;  %v6351_v26 = vld [vmem:[%s7619_s2 + $0x1] ss:$0 sm:$0xff] }
 0x122   : > { %v6972_v30 = vpop.f32.mrf.mxu1  ;;  %7087 = vmatpush3.xpose.msk.msra.mxu0 %vm2313_vm3, %v1440_v25 }
 0x123   : > { %7092 = vmatpush3.xpose.msk.msra.mxu1 %vm2313_vm3, %v1492_v28  ;;  %v1442_v32 = vpop.f32.mrf.mxu0  ;;  %7096 = vmatprep.subr.mxu0 %v7481_v2 }
 0x124   : > { %v1494_v34 = vpop.f32.mrf.mxu1  ;;  %7101 = vmatprep.subr.mxu1 %v7481_v2 }
 0x125   : > { %v6965_v35 = vpop.f32.mrf.mxu0  ;;  %7089 = vmatmul.mubr.msk.f32.vlgmr.msra.gmra.mxu0 %vm2313_vm3, %v936_v31 }
 0x126   : > { %v6973_v37 = vpop.f32.mrf.mxu1  ;;  %7094 = vmatmul.mubr.msk.f32.vlgmr.msra.gmra.mxu1 %vm2313_vm3, %v988_v33  ;;  %7098 = vmatprep.mubr.msk.f32.mxu0 %vm7482_vm1, %v7481_v2 }
 0x127   : > { %v1543_v39 = vpop.f32.mrf.mxu0  ;;  %7103 = vmatprep.mubr.msk.f32.mxu1 %vm7482_vm1, %v7481_v2 }
 0x128   : > { %v1544_v41 = vadd.f32 %v6320_v36, %v1543_v39  ;;  %v1595_v42 = vpop.f32.mrf.mxu1 }
 0x129   : > { %v1596_v44 = vadd.f32 %v6321_v38, %v1595_v42  ;;  %v6980_v45 = vpop.f32.mrf.mxu0 }
 0x12a   : > { %v6988_v46 = vpop.f32.mrf.mxu1  ;;  %7097 = vmatpush3.xpose.msk.msra.mxu0 %vm2313_vm3, %v1544_v41 }
 0x12b   : > { %7102 = vmatpush3.xpose.msk.msra.mxu1 %vm2313_vm3, %v1596_v44  ;;  %v1546_v48 = vpop.f32.mrf.mxu0  ;;  %7106 = vmatprep.subr.mxu0 %v7481_v2 }
 0x12c   : > { %v1598_v50 = vpop.f32.mrf.mxu1  ;;  %7111 = vmatprep.subr.mxu1 %v7481_v2 }
 0x12d   : > { %v6981_v51 = vpop.f32.mrf.mxu0  ;;  %7099 = vmatmul.mubr.msk.f32.vlgmr.msra.gmra.mxu0 %vm2313_vm3, %v1040_v47 }
 0x12e   : > { %v6989_v53 = vpop.f32.mrf.mxu1  ;;  %7104 = vmatmul.mubr.msk.f32.vlgmr.msra.gmra.mxu1 %vm2313_vm3, %v1092_v49  ;;  %7108 = vmatprep.mubr.msk.f32.mxu0 %vm7482_vm1, %v7481_v2 }
 0x12f   : > { %v1647_v55 = vpop.f32.mrf.mxu0  ;;  %7113 = vmatprep.mubr.msk.f32.mxu1 %vm7482_vm1, %v7481_v2 }
 0x130   : > { %v1648_v57 = vadd.f32 %v6322_v52, %v1647_v55  ;;  %v1699_v58 = vpop.f32.mrf.mxu1 }
 0x131   : > { %v1700_v60 = vadd.f32 %v6323_v54, %v1699_v58  ;;  %v6996_v61 = vpop.f32.mrf.mxu0 }
 0x132   : > { %v7004_v62 = vpop.f32.mrf.mxu1  ;;  %7107 = vmatpush3.xpose.msk.msra.mxu0 %vm2313_vm3, %v1648_v57 }
 0x133   : > { %7112 = vmatpush3.xpose.msk.msra.mxu1 %vm2313_vm3, %v1700_v60  ;;  %v1650_v0 = vpop.f32.mrf.mxu0  ;;  %7116 = vmatprep.subr.mxu0 %v7481_v2 }
 0x134   : > { %v1702_v3 = vpop.f32.mrf.mxu1  ;;  %7121 = vmatprep.subr.mxu1 %v7481_v2 }
 0x135   : > { %v6997_v4 = vpop.f32.mrf.mxu0  ;;  %7109 = vmatmul.mubr.msk.f32.vlgmr.msra.gmra.mxu0 %vm2313_vm3, %v1144_v63 }
 0x136   : > { %v7005_v8 = vpop.f32.mrf.mxu1  ;;  %7114 = vmatmul.mubr.msk.f32.vlgmr.msra.gmra.mxu1 %vm2313_vm3, %v1196_v1  ;;  %7118 = vmatprep.mubr.msk.f32.mxu0 %vm7482_vm1, %v7481_v2 }
 0x137   : > { %v1751_v9 = vpop.f32.mrf.mxu0  ;;  %7123 = vmatprep.mubr.msk.f32.mxu1 %vm7482_vm1, %v7481_v2 }
 0x138   : > { %v1752_v6 = vadd.f32 %v6324_v7, %v1751_v9  ;;  %v1803_v11 = vpop.f32.mrf.mxu1 }
 0x139   : > { %v1804_v15 = vadd.f32 %v6325_v5, %v1803_v11  ;;  %v7012_v16 = vpop.f32.mrf.mxu0 }
 0x13a   : > { %7117 = vmatpush3.xpose.msk.msra.mxu0 %vm2313_vm3, %v1752_v6  ;;  %v7020_v17 = vpop.f32.mrf.mxu1 }
 0x13b   : > { %7122 = vmatpush3.xpose.msk.msra.mxu1 %vm2313_vm3, %v1804_v15  ;;  %v1754_v19 = vpop.f32.mrf.mxu0  ;;  %7126 = vmatprep.subr.mxu0 %v7481_v2 }
 0x13c   : > { %v1806_v21 = vpop.f32.mrf.mxu1  ;;  %7131 = vmatprep.subr.mxu1 %v7481_v2 }
 0x13d   : > { %v7013_v22 = vpop.f32.mrf.mxu0  ;;  %7119 = vmatmul.mubr.msk.f32.vlgmr.msra.gmra.mxu0 %vm2313_vm3, %v1248_v18 }
 0x13e   : > { %7124 = vmatmul.mubr.msk.f32.vlgmr.msra.gmra.mxu1 %vm2313_vm3, %v1300_v20  ;;  %v7021_v23 = vpop.f32.mrf.mxu1  ;;  %7128 = vmatprep.mubr.msk.f32.mxu0 %vm7482_vm1, %v7481_v2 }
 0x13f   : > { %7133 = vmatprep.mubr.msk.f32.mxu1 %vm7482_vm1, %v7481_v2  ;;  %v1943_v13 = vpop.f32.mrf.mxu0 }
 0x140   : > { %v1944_v25 = vadd.f32 %v6350_v24, %v1943_v13 }
 0x141   : > { %v7028_v14 = vpop.f32.mrf.mxu0  ;;  %v1995_v27 = vpop.f32.mrf.mxu1 }
 0x142   : > { %7127 = vmatpush3.msra.mxu0 %v1944_v25  ;;  %v1996_v29 = vadd.f32 %v6351_v26, %v1995_v27 }
 0x143   : > { %v1946_v28 = vpop.f32.mrf.mxu0  ;;  %7136 = vmatprep.subr.mxu0 %v7481_v2  ;;  %v7036_v30 = vpop.f32.mrf.mxu1 }
 0x144   : > { %7132 = vmatpush3.msra.mxu1 %v1996_v29 }
 0x145   : > { %v7029_v31 = vpop.f32.mrf.mxu0  ;;  %v1998_v32 = vpop.f32.mrf.mxu1  ;;  %7141 = vmatprep.subr.mxu1 %v7481_v2 }
 0x147   : > { %v7946_v33 = vpop.f32.mrf.mxu0  ;;  %v7037_v34 = vpop.f32.mrf.mxu1 }
 0x149   : > { %v7044_v35 = vpop.f32.mrf.mxu0  ;;  %v7949_v36 = vpop.f32.mrf.mxu1 }
 0x14b   : > { %v2050_v37 = vpop.f32.mrf.mxu0  ;;  %v7052_v38 = vpop.f32.mrf.mxu1 }
 0x14d   : > { %v7045_v39 = vpop.f32.mrf.mxu0  ;;  %v2102_v40 = vpop.f32.mrf.mxu1 }
 0x14f   : > { %v7951_v41 = vpop.f32.mrf.mxu0  ;;  %v7053_v42 = vpop.f32.mrf.mxu1 }
 0x151   : > { %v7060_v43 = vpop.f32.mrf.mxu0  ;;  %v7953_v44 = vpop.f32.mrf.mxu1 }
 0x153   : > { %v2154_v45 = vpop.f32.mrf.mxu0  ;;  %v7068_v46 = vpop.f32.mrf.mxu1 }
 0x155   : > { %v7061_v47 = vpop.f32.mrf.mxu0  ;;  %v2206_v48 = vpop.f32.mrf.mxu1 }
 0x157   : > { %v7955_v49 = vpop.f32.mrf.mxu0  ;;  %v7069_v50 = vpop.f32.mrf.mxu1 }
 0x159   : > { %v7076_v51 = vpop.f32.mrf.mxu0  ;;  %v7957_v52 = vpop.f32.mrf.mxu1 }
 0x15b   : > { %v2258_v53 = vpop.f32.mrf.mxu0  ;;  %v7084_v54 = vpop.f32.mrf.mxu1 }
 0x15d   : > { %v7077_v55 = vpop.f32.mrf.mxu0  ;;  %v2310_v56 = vpop.f32.mrf.mxu1 }
 0x15f   : > { %v7085_v57 = vpop.f32.mrf.mxu1 }
 0x1e5   : > { %v2386_v58 = vpop.f32.mrf.mxu0 }
 0x1e6   : > { %v2462_v59 = vpop.f32.mrf.mxu1  ;;  %v2923_v60 = vsel %vm2922_vm4, %v2386_v58, -inf }
 0x1e7   : > { %2924 = vmax.xlane.f32.xlu0 %v2923_v60  ;;  %v7090_v61 = vpop.f32.mrf.mxu0  ;;  %v2926_v63 = vsel %vm2922_vm4, %v2462_v59, -inf }
 0x1e8   : > { %v7095_v62 = vpop.f32.mrf.mxu1 }
 0x1eb   : > { %2927 = vmax.xlane.f32.xlu0 %v2926_v63 }
 0x1ed   : > { %v2538_v0 = vpop.f32.mrf.mxu0 }
 0x1ee   : > { %v2614_v1 = vpop.f32.mrf.mxu1  ;;  %v2929_v3 = vsel %vm2922_vm4, %v2538_v0, -inf }
 0x1ef   : > { %2930 = vmax.xlane.f32.xlu1 %v2929_v3  ;;  %v7100_v4 = vpop.f32.mrf.mxu0  ;;  %v2932_v8 = vsel %vm2922_vm4, %v2614_v1, -inf }
 0x1f0   : > { %v7105_v7 = vpop.f32.mrf.mxu1 }
 0x1f3   : > { %2933 = vmax.xlane.f32.xlu1 %v2932_v8  ;;  %v6352_v8 = vld [vmem:[%s7619_s2 + $0x2] ss:$0 sm:$0xff] }
 0x1f5   : > { %v2690_v5 = vpop.f32.mrf.mxu0 }
 0x1f6   : > { %v2766_v9 = vpop.f32.mrf.mxu1  ;;  %v2935_v10 = vsel %vm2922_vm4, %v2690_v5, -inf }
 0x1f7   : > { %v2938_v6 = vsel %vm2922_vm4, %v2766_v9, -inf  ;;  %2936 = vmax.xlane.f32.xlu0 %v2935_v10  ;;  %v7110_v11 = vpop.f32.mrf.mxu0  ;;  %v2048_v10 = vadd.f32 %v6352_v8, %v7946_v33 }
 0x1f8   : > { %v7115_v12 = vpop.f32.mrf.mxu1  ;;  %2939 = vmax.xlane.f32.xlu1 %v2938_v6  ;;  %v6353_v11 = vld [vmem:[%s7619_s2 + $0x3] ss:$0 sm:$0xff] }
 0x1fd   : > { %v2842_v15 = vpop.f32.mrf.mxu0 }
 0x1fe   : > { %v2918_v16 = vpop.f32.mrf.mxu1  ;;  %v2941_v17 = vsel %vm2922_vm4, %v2842_v15, -inf }
 0x1ff   : > { %v2944_v18 = vsel %vm2922_vm4, %v2918_v16, -inf  ;;  %2942 = vmax.xlane.f32.xlu0 %v2941_v17  ;;  %v7120_v19 = vpop.f32.mrf.mxu0  ;;  %v2100_v17 = vadd.f32 %v6353_v11, %v7949_v36 }
 0x200   : > { %v7125_v20 = vpop.f32.mrf.mxu1  ;;  %2945 = vmax.xlane.f32.xlu1 %v2944_v18  ;;  %v6354_v18 = vld [vmem:[%s7619_s2 + $0x4] ss:$0 sm:$0xff] }
 0x201   : > { %v2152_v20 = vadd.f32 %v6354_v18, %v7951_v41 }
 0x270   : > { %v2925_v21 = vpop.xlane.xlu0 %2924 }
 0x271   : > { %v2947_v22 = vsub.f32 %v2386_v58, %v2925_v21 }
 0x273   : > { %v2955_v23 = vmul.f32 1.442695, %v2947_v22  ;;  %v6355_v22 = vld [vmem:[%s7619_s2 + $0x5] ss:$0 sm:$0xff] }
 0x274   : > { %v2928_v24 = vpop.xlane.xlu0 %2927 }
 0x275   : > { %7408 = vpow2.f32 %v2955_v23  ;;  %v2948_v13 = vsub.f32 %v2462_v59, %v2928_v24 }
 0x277   : > { %v2957_v25 = vmul.f32 1.442695, %v2948_v13  ;;  %v2204_v13 = vadd.f32 %v6355_v22, %v7953_v44 }
 0x278   : > { %v2931_v26 = vpop.xlane.xlu1 %2930 }
 0x279   : > { %7410 = vpow2.f32 %v2957_v25  ;;  %v2949_v14 = vsub.f32 %v2538_v0, %v2931_v26  ;;  %v6356_v25 = vld [vmem:[%s7619_s2 + $0x6] ss:$0 sm:$0xff]  ;;  %v6357_v26 = vld [vmem:[%s7619_s2 + $0x7] ss:$0 sm:$0xff] }
 0x27a   : > { %v2308_v44 = vadd.f32 %v6357_v26, %v7957_v52 }
 0x27b   : > { %v2959_v27 = vmul.f32 1.442695, %v2949_v14 }
 0x27c   : > { %v2934_v28 = vpop.xlane.xlu1 %2933 }
 0x27d   : > { %7412 = vpow2.f32 %v2959_v27  ;;  %v2950_v29 = vsub.f32 %v2614_v1, %v2934_v28  ;;  %v2256_v28 = vadd.f32 %v6356_v25, %v7955_v49 }
 0x27f   : > { %v2961_v30 = vmul.f32 1.442695, %v2950_v29 }
 0x280   : > { %v2937_v31 = vpop.xlane.xlu0 %2936 }
 0x281   : > { %7414 = vpow2.f32 %v2961_v30  ;;  %v2940_v32 = vpop.xlane.xlu1 %2939  ;;  %v2951_v34 = vsub.f32 %v2690_v5, %v2937_v31 }
 0x282   : > { %v7409_v35 = vpop.eup %7408  ;;  %v2952_v37 = vsub.f32 %v2766_v9, %v2940_v32  ;;  %v3603_v32 = vld [vmem:[%s7629_s24] sm:$0x3] }
 0x283   : > { %v2963_v38 = vmul.f32 1.442695, %v2951_v34  ;;  %v2971_v39 = vsel %vm2922_vm4, %v7409_v35, 0.0  ;;  %v3616_v34 = vsel %vm3614_vm5, %v3603_v32, 0 }
 0x284   : > { %v2965_v40 = vmul.f32 1.442695, %v2952_v37  ;;  %2972 = vadd.xlane.f32.xlu0 %v2971_v39 }
 0x285   : > { %7416 = vpow2.f32 %v2963_v38  ;;  %v3605_v38 = vld [vmem:[%s7629_s24 + $0x4] sm:$0x3] }
 0x286   : > { %v7411_v42 = vpop.eup %7410  ;;  %7418 = vpow2.f32 %v2965_v40 }
 0x287   : > { %v2974_v43 = vsel %vm2922_vm4, %v7411_v42, 0.0 }
 0x288   : > { %2975 = vadd.xlane.f32.xlu1 %v2974_v43  ;;  %v2943_v45 = vpop.xlane.xlu0 %2942 }
 0x289   : > { %v2946_v46 = vpop.xlane.xlu1 %2945  ;;  %v2953_v47 = vsub.f32 %v2842_v15, %v2943_v45  ;;  %v3606_v45 = vld [vmem:[%s7629_s24 + $0x6] sm:$0x3] }
 0x28a   : > { %v7413_v48 = vpop.eup %7412  ;;  %v2954_v50 = vsub.f32 %v2918_v16, %v2946_v46 }
 0x28b   : > { %v2967_v51 = vmul.f32 1.442695, %v2953_v47  ;;  %v2977_v53 = vsel %vm2922_vm4, %v7413_v48, 0.0 }
 0x28c   : > { %v2969_v54 = vmul.f32 1.442695, %v2954_v50  ;;  %2978 = vadd.xlane.f32.xlu0 %v2977_v53 }
 0x28d   : > { %7420 = vpow2.f32 %v2967_v51  ;;  %v3607_v51 = vld [vmem:[%s7629_s24 + $0x8] sm:$0x3] }
 0x28e   : > { %v7415_v55 = vpop.eup %7414  ;;  %7422 = vpow2.f32 %v2969_v54 }
 0x28f   : > { %v2980_v56 = vsel %vm2922_vm4, %v7415_v55, 0.0 }
 0x290   : > { %2981 = vadd.xlane.f32.xlu1 %v2980_v56 }
 0x292   : > { %v7971_v57 = vpop.eup %7416 }
 0x293   : > { %v7973_v58 = vpop.eup %7418  ;;  %v2983_v59 = vsel %vm2922_vm4, %v7971_v57, 0.0 }
 0x294   : > { %v2986_v60 = vsel %vm2922_vm4, %v7973_v58, 0.0  ;;  %2984 = vadd.xlane.f32.xlu0 %v2983_v59 }
 0x295   : > { %2987 = vadd.xlane.f32.xlu1 %v2986_v60 }
 0x29a   : > { %v7979_v61 = vpop.eup %7420 }
 0x29b   : > { %v7981_v62 = vpop.eup %7422  ;;  %v2989_v63 = vsel %vm2922_vm4, %v7979_v61, 0.0 }
 0x29c   : > { %v2992_v0 = vsel %vm2922_vm4, %v7981_v62, 0.0  ;;  %2990 = vadd.xlane.f32.xlu0 %v2989_v63 }
 0x29d   : > { %2993 = vadd.xlane.f32.xlu1 %v2992_v0 }
 0x30d   : > { %v2973_v1 = vpop.xlane.xlu0 %2972 }
 0x30e   : > { %7424 = vrcp.f32 %v2973_v1 }
 0x311   : > { %v2976_v3 = vpop.xlane.xlu1 %2975 }
 0x312   : > { %7426 = vrcp.f32 %v2976_v3 }
 0x315   : > { %v2979_v4 = vpop.xlane.xlu0 %2978 }
 0x316   : > { %7428 = vrcp.f32 %v2979_v4 }
 0x319   : > { %v2982_v7 = vpop.xlane.xlu1 %2981 }
 0x31a   : > { %7430 = vrcp.f32 %v2982_v7  ;;  %v3610_v7 = vld [vmem:[%s7629_s24 + $0xe] sm:$0x3] }
 0x31b   : > { %v7425_v5 = vpop.eup %7424 }
 0x31c   : > { %v3003_v9 = vmul.f32 %v7425_v5, %v7409_v35  ;;  %v3604_v35 = vld [vmem:[%s7629_s24 + $0x2] sm:$0x3] }
 0x31d   : > { %v2985_v6 = vpop.xlane.xlu0 %2984  ;;  %v3662_v37 = vsel %vm3614_vm5, %v3604_v35, 0 }
 0x31e   : > { %v2988_v12 = vpop.xlane.xlu1 %2987  ;;  %7432 = vrcp.f32 %v2985_v6  ;;  %7129 = vmatmul.mubr.msk.f32.vlgmr.msra.gmra.mxu0 %vm2922_vm4, %v3003_v9  ;;  %v3938_v9 = vsel %vm3614_vm5, %v3610_v7, 0 }
 0x31f   : > { %v7427_v15 = vpop.eup %7426  ;;  %7434 = vrcp.f32 %v2988_v12  ;;  %7137 = vmatpush3.msra.mxu0 %v2048_v10  ;;  %7138 = vmatprep.mubr.msk.f32.mxu0 %vm7482_vm1, %v7481_v2 }
 0x320   : > { %v3004_v16 = vmul.f32 %v7427_v15, %v7411_v42  ;;  %7146 = vmatprep.subr.mxu0 %v7481_v2  ;;  %v3708_v42 = vsel %vm3614_vm5, %v3605_v38, 0 }
 0x322   : > { %7134 = vmatmul.mubr.msk.f32.vlgmr.msra.gmra.mxu1 %vm2922_vm4, %v3004_v16 }
 0x323   : > { %v7429_v33 = vpop.eup %7428  ;;  %7142 = vmatpush3.msra.mxu1 %v2100_v17  ;;  %7143 = vmatprep.mubr.msk.f32.mxu1 %vm7482_vm1, %v7481_v2 }
 0x324   : > { %v3005_v19 = vmul.f32 %v7429_v33, %v7413_v48  ;;  %7151 = vmatprep.subr.mxu1 %v7481_v2  ;;  %v3754_v48 = vsel %vm3614_vm5, %v3606_v45, 0 }
 0x325   : > { %v2991_v21 = vpop.xlane.xlu0 %2990 }
 0x326   : > { %v2994_v23 = vpop.xlane.xlu1 %2993  ;;  %7436 = vrcp.f32 %v2991_v21  ;;  %7139 = vmatmul.mubr.msk.f32.vlgmr.msra.gmra.mxu0 %vm2922_vm4, %v3005_v19 }
 0x327   : > { %v7431_v36 = vpop.eup %7430  ;;  %7438 = vrcp.f32 %v2994_v23  ;;  %7147 = vmatpush3.msra.mxu0 %v2152_v20  ;;  %7148 = vmatprep.mubr.msk.f32.mxu0 %vm7482_vm1, %v7481_v2 }
 0x328   : > { %v3006_v24 = vmul.f32 %v7431_v36, %v7415_v55  ;;  %7156 = vmatprep.subr.mxu0 %v7481_v2  ;;  %v3800_v55 = vsel %vm3614_vm5, %v3607_v51, 0 }
 0x32a   : > { %7144 = vmatmul.mubr.msk.f32.vlgmr.msra.gmra.mxu1 %vm2922_vm4, %v3006_v24 }
 0x32b   : > { %v7433_v41 = vpop.eup %7432  ;;  %7152 = vmatpush3.msra.mxu1 %v2204_v13  ;;  %7153 = vmatprep.mubr.msk.f32.mxu1 %vm7482_vm1, %v7481_v2 }
 0x32c   : > { %v7435_v14 = vpop.eup %7434  ;;  %7161 = vmatprep.subr.mxu1 %v7481_v2  ;;  %v3007_v27 = vmul.f32 %v7433_v41, %v7971_v57  ;;  %v3608_v57 = vld [vmem:[%s7629_s24 + $0xa] sm:$0x3] }
 0x32d   : > { %v3008_v29 = vmul.f32 %v7435_v14, %v7973_v58  ;;  %v3846_v60 = vsel %vm3614_vm5, %v3608_v57, 0 }
 0x32e   : > { %7149 = vmatmul.mubr.msk.f32.vlgmr.msra.gmra.mxu0 %vm2922_vm4, %v3007_v27 }
 0x32f   : > { %7154 = vmatmul.mubr.msk.f32.vlgmr.msra.gmra.mxu1 %vm2922_vm4, %v3008_v29  ;;  %7157 = vmatpush3.msra.mxu0 %v2256_v28 }
 0x330   : > { %7162 = vmatpush3.msra.mxu1 %v2308_v44  ;;  %7158 = vmatprep.mubr.msk.f32.mxu0 %vm7482_vm1, %v7481_v2 }
 0x331   : > { %7163 = vmatprep.mubr.msk.f32.mxu1 %vm7482_vm1, %v7481_v2  ;;  %7166 = vmatprep.subr.bf16.mxu0 %v7481_v2 }
 0x332   : > { %7172 = vmatprep.subr.bf16.mxu1 %v7481_v2 }
 0x333   : > { %v7437_v49 = vpop.eup %7436 }
 0x334   : > { %v7439_v52 = vpop.eup %7438  ;;  %v3009_v30 = vmul.f32 %v7437_v49, %v7979_v61 }
 0x335   : > { %v3010_v31 = vmul.f32 %v7439_v52, %v7981_v62  ;;  %v3609_v62 = vld [vmem:[%s7629_s24 + $0xc] sm:$0x3]  ;;  %s8464_s24 = scalar_lea.vmem %s8420_s8, %s7587_s26 }
 0x336   : > { %7159 = vmatmul.mubr.msk.f32.vlgmr.msra.gmra.mxu0 %vm2922_vm4, %v3009_v30  ;;  %v3892_v3 = vsel %vm3614_vm5, %v3609_v62, 0 }
 0x337   : > { %7164 = vmatmul.mubr.msk.f32.vlgmr.msra.gmra.mxu1 %vm2922_vm4, %v3010_v31  ;;  %7168 = vmatprep.mubr.msk.bf16.mxu0 %vm7482_vm1, %v7481_v2 }
 0x338   : > { %7174 = vmatprep.mubr.msk.bf16.mxu1 %vm7482_vm1, %v7481_v2  ;;  %7167 = vmatpush3.bf16.msra.mxu0 %v3616_v34 }
 0x339   : > { %7178 = vmatprep.subr.bf16.mxu0 %v7481_v2  ;;  %7173 = vmatpush3.bf16.msra.mxu1 %v3662_v37 }
 0x33a   : > { %7184 = vmatprep.subr.bf16.mxu1 %v7481_v2 }
 0x3de   : > { %v3080_v39 = vpop.f32.mrf.mxu0 }
 0x3df   : > { %v3595_v40 = vpack.c.bf16 %v3080_v39, %v3080_v39 }
 0x3e0   : > { %v7130_v43 = vpop.f32.mrf.mxu0 }
 0x3e1   : > { %7169 = vmatmul.mubr.msk.bf16.vlgmr.msra.gmra.mxu0 %vm2313_vm3, %v3595_v40 }
 0x3e2   : > { %v3153_v46 = vpop.f32.mrf.mxu1  ;;  %7179 = vmatpush3.bf16.msra.mxu0 %v3708_v42  ;;  %7180 = vmatprep.mubr.msk.bf16.mxu0 %vm7482_vm1, %v7481_v2 }
 0x3e3   : > { %v3596_v47 = vpack.c.bf16 %v3153_v46, %v3153_v46  ;;  %7190 = vmatprep.subr.bf16.mxu0 %v7481_v2 }
 0x3e4   : > { %v7135_v50 = vpop.f32.mrf.mxu1 }
 0x3e5   : > { %7175 = vmatmul.mubr.msk.bf16.vlgmr.msra.gmra.mxu1 %vm2313_vm3, %v3596_v47 }
 0x3e6   : > { %v3226_v53 = vpop.f32.mrf.mxu0  ;;  %7185 = vmatpush3.bf16.msra.mxu1 %v3754_v48  ;;  %7186 = vmatprep.mubr.msk.bf16.mxu1 %vm7482_vm1, %v7481_v2 }
 0x3e7   : > { %v3597_v54 = vpack.c.bf16 %v3226_v53, %v3226_v53  ;;  %7196 = vmatprep.subr.bf16.mxu1 %v7481_v2 }
 0x3e8   : > { %v7140_v56 = vpop.f32.mrf.mxu0 }
 0x3e9   : > { %7181 = vmatmul.mubr.msk.bf16.vlgmr.msra.gmra.mxu0 %vm2313_vm3, %v3597_v54  ;;  %v6414_v56 = vld [vmem:[%s8464_s24] ss:$0 sm:$0xff] }
 0x3ea   : > { %v3299_v58 = vpop.f32.mrf.mxu1  ;;  %7191 = vmatpush3.bf16.msra.mxu0 %v3800_v55  ;;  %7192 = vmatprep.mubr.msk.bf16.mxu0 %vm7482_vm1, %v7481_v2 }
 0x3eb   : > { %v3598_v59 = vpack.c.bf16 %v3299_v58, %v3299_v58  ;;  %7202 = vmatprep.subr.bf16.mxu0 %v7481_v2 }
 0x3ec   : > { %v7145_v61 = vpop.f32.mrf.mxu1 }
 0x3ed   : > { %7187 = vmatmul.mubr.msk.bf16.vlgmr.msra.gmra.mxu1 %vm2313_vm3, %v3598_v59 }
 0x3ee   : > { %v3372_v63 = vpop.f32.mrf.mxu0  ;;  %7197 = vmatpush3.bf16.msra.mxu1 %v3846_v60  ;;  %7198 = vmatprep.mubr.msk.bf16.mxu1 %vm7482_vm1, %v7481_v2 }
 0x3ef   : > { %v3599_v0 = vpack.c.bf16 %v3372_v63, %v3372_v63  ;;  %v3445_v1 = vpop.f32.mrf.mxu1  ;;  %7208 = vmatprep.subr.bf16.mxu1 %v7481_v2  ;;  %v7444_v63 = vld [vmem:[#allocation2] sm:$0xff] }
 0x3f0   : > { %v7150_v4 = vpop.f32.mrf.mxu0  ;;  %v3600_v5 = vpack.c.bf16 %v3445_v1, %v3445_v1 }
 0x3f1   : > { %v7155_v8 = vpop.f32.mrf.mxu1  ;;  %7193 = vmatmul.mubr.msk.bf16.vlgmr.msra.gmra.mxu0 %vm2313_vm3, %v3599_v0 }
 0x3f2   : > { %7203 = vmatpush3.bf16.msra.mxu0 %v3892_v3  ;;  %7204 = vmatprep.mubr.msk.bf16.mxu0 %vm7482_vm1, %v7481_v2 }
 0x3f5   : > { %7199 = vmatmul.mubr.msk.bf16.vlgmr.msra.gmra.mxu1 %vm2313_vm3, %v3600_v5 }
 0x3f6   : > { %v3518_v10 = vpop.f32.mrf.mxu0  ;;  %7209 = vmatpush3.bf16.msra.mxu1 %v3938_v9  ;;  %7210 = vmatprep.mubr.msk.bf16.mxu1 %vm7482_vm1, %v7481_v2  ;;  %v4051_v9 = vld [vmem:[%s7643_s6 + $0x80] sm:$0xff] }
 0x3f7   : > { %v3601_v6 = vpack.c.bf16 %v3518_v10, %v3518_v10  ;;  %v3591_v11 = vpop.f32.mrf.mxu1  ;;  %v4059_v10 = vld [vmem:[%s7643_s6 + $0xc0] sm:$0xff] }
 0x3f8   : > { %v7160_v12 = vpop.f32.mrf.mxu0  ;;  %v3602_v16 = vpack.c.bf16 %v3591_v11, %v3591_v11  ;;  %v6434_v11 = vcombine.high %v4051_v9, %v4059_v10 }
 0x3f9   : > { %v7165_v15 = vpop.f32.mrf.mxu1  ;;  %7205 = vmatmul.mubr.msk.bf16.vlgmr.msra.gmra.mxu0 %vm2313_vm3, %v3601_v6  ;;  %v4052_v6 = vld [vmem:[%s7643_s6 + $0x88] sm:$0xff] }
 0x3fa   : > { %v4060_v12 = vld [vmem:[%s7643_s6 + $0xc8] sm:$0xff]  ;;  %v6433_v15 = vcombine.low %v4051_v9, %v4059_v10  ;;  %4326 = vmatprep.subr.bf16.mxu0 %v6434_v11  ;;  %v4041_v10 = vld [vmem:[%s7643_s6 + $0x30] sm:$0xff]  ;;  %v4042_v11 = vld [vmem:[%s7643_s6 + $0x38] sm:$0xff] }
 0x3fc   : > { %4327 = vmatpush1.bf16.msra.mxu0 %v6433_v15 }
 0x3fd   : > { %7211 = vmatmul.mubr.msk.bf16.vlgmr.msra.gmra.mxu1 %vm2313_vm3, %v3602_v16  ;;  %v6435_v16 = vcombine.low %v4052_v6, %v4060_v12 }
 0x4a1   : > { %v3652_v17 = vpop.f32.mrf.mxu0 }
 0x4a2   : > { %v3980_v28 = vsel %vm897_vm2, %v3652_v17, 0.0  ;;  %v6436_v17 = vcombine.high %v4052_v6, %v4060_v12  ;;  %v4049_v6 = vld [vmem:[%s7643_s6 + $0x70] sm:$0xff]  ;;  %v4050_v12 = vld [vmem:[%s7643_s6 + $0x78] sm:$0xff] }
 0x4a3   : > { %v7170_v18 = vpop.f32.mrf.mxu0 }
 0x4a4   : > { %4367 = vmatprep.subr.bf16.mxu1 %v6436_v17  ;;  %v4035_v18 = vld [vmem:[%s7643_s6] sm:$0xff]  ;;  %v6430_v17 = vcombine.high %v4041_v10, %v4049_v6 }
 0x4a5   : > { %v3655_v33 = vpop.f32.mrf.mxu0  ;;  %v3698_v19 = vpop.f32.mrf.mxu1  ;;  %4368 = vmatpush1.bf16.msra.mxu1 %v6435_v16 }
 0x4a6   : > { %v3981_v26 = vsel %vm897_vm2, %v3698_v19, 0.0  ;;  %v4043_v33 = vld [vmem:[%s7643_s6 + $0x40] sm:$0xff]  ;;  %v4036_v19 = vld [vmem:[%s7643_s6 + $0x8] sm:$0xff] }
 0x4a7   : > { %v7171_v20 = vpop.f32.mrf.mxu0  ;;  %v7176_v21 = vpop.f32.mrf.mxu1  ;;  %v3982_v44 = vadd.f32 %v3981_v26, %v3980_v28 }
 0x4a8   : > { %v6418_v20 = vcombine.high %v4035_v18, %v4043_v33  ;;  %v4044_v21 = vld [vmem:[%s7643_s6 + $0x48] sm:$0xff] }
 0x4a9   : > { %v3701_v22 = vpop.f32.mrf.mxu1  ;;  %v3744_v23 = vpop.f32.mrf.mxu0 }
 0x4aa   : > { %v3983_v29 = vsel %vm897_vm2, %v3744_v23, 0.0  ;;  %v6417_v22 = vcombine.low %v4035_v18, %v4043_v33  ;;  %v6419_v23 = vcombine.low %v4036_v19, %v4044_v21  ;;  %4328 = vmatprep.subr.bf16.mxu0 %v6418_v20  ;;  %v6432_v18 = vcombine.high %v4042_v11, %v4050_v12  ;;  %v7280_v20 = vld [vmem:[%s7658_s29 + $0x78] sm:$0xff]  }
 0x4ab   : > { %v7177_v36 = vpop.f32.mrf.mxu1  ;;  %v7182_v24 = vpop.f32.mrf.mxu0  ;;  %v3984_v31 = vadd.f32 %v3983_v29, %v3982_v44  ;;  %v6429_v33 = vcombine.low %v4041_v10, %v4049_v6 }
 0x4ac   : > { %v6420_v36 = vcombine.high %v4036_v19, %v4044_v21  ;;  %4329 = vmatpush1.bf16.msra.mxu0 %v6417_v22  ;;  %v4053_v24 = vld [vmem:[%s7643_s6 + $0x90] sm:$0xff]  ;;  %v6431_v19 = vcombine.low %v4042_v11, %v4050_v12  ;;  %v7281_v21 = vld [vmem:[%s7658_s29 + $0xf8] sm:$0xff]  }
 0x4ad   : > { %v3747_v2 = vpop.f32.mrf.mxu0  ;;  %v3790_v13 = vpop.f32.mrf.mxu1  ;;  %v7282_v22 = vld [vmem:[%s7658_s29 + $0x38] sm:$0xff]  }
 0x4ae   : > { %v3985_v30 = vsel %vm897_vm2, %v3790_v13, 0.0  ;;  %4369 = vmatprep.subr.bf16.mxu1 %v6420_v36  ;;  %v4061_v2 = vld [vmem:[%s7643_s6 + $0xd0] sm:$0xff]  ;;  %v4054_v13 = vld [vmem:[%s7643_s6 + $0x98] sm:$0xff] }
 0x4af   : > { %v7183_v25 = vpop.f32.mrf.mxu0  ;;  %v7188_v41 = vpop.f32.mrf.mxu1  ;;  %v3986_v37 = vadd.f32 %v3985_v30, %v3984_v31  ;;  %4370 = vmatpush1.bf16.msra.mxu1 %v6419_v23  ;;  %v6438_v26 = vcombine.high %v4053_v24, %v4061_v2  ;;  %v6415_v30 = vld [vmem:[%s8465_s17] ss:$0 sm:$0xff]  ;;  %v7283_v23 = vld [vmem:[%s7658_s29 + $0xb8] sm:$0xff]   ;;  %v7284_v36 = vld [vmem:[%s7658_s29 + $0x70] sm:$0xff]  }
 0x4b0   : > { %v7483_v25 = vmov 0   ;;  %v6437_v41 = vcombine.low %v4053_v24, %v4061_v2  ;;  %v7285_v24 = vld [vmem:[%s7658_s29 + $0xf0] sm:$0xff]  }
 0x4b1   : > { %v3793_v14 = vpop.f32.mrf.mxu1  ;;  %v3836_v27 = vpop.f32.mrf.mxu0  ;;  %4346 = vmatprep.mubr.bf16.mxu0 %v7483_v25  ;;  %4387 = vmatprep.mubr.bf16.mxu1 %v7483_v25  ;;  %v7286_v2 = vld [vmem:[%s7658_s29 + $0x30] sm:$0xff]  }
 0x4b2   : > { %v3987_v35 = vsel %vm897_vm2, %v3836_v27, 0.0  ;;  %v4062_v14 = vld [vmem:[%s7643_s6 + $0xd8] sm:$0xff]  ;;  %4408 = vmatprep.subr.bf16.mxu0 %v6438_v26  ;;  %v7290_v26 = vld [vmem:[%s7658_s29 + $0x28] sm:$0xff]  }
 0x4b3   : > { %v7189_v49 = vpop.f32.mrf.mxu1  ;;  %v7194_v52 = vpop.f32.mrf.mxu0  ;;  %v3988_v42 = vadd.f32 %v3987_v35, %v3986_v37  ;;  %v6439_v27 = vcombine.low %v4054_v13, %v4062_v14  ;;  %v6440_v28 = vcombine.high %v4054_v13, %v4062_v14  ;;  %v4037_v35 = vld [vmem:[%s7643_s6 + $0x10] sm:$0xff]  ;;  %v7291_v14 = vld [vmem:[%s7658_s29 + $0xa8] sm:$0xff]  }
 0x4b4   : > { %v4045_v37 = vld [vmem:[%s7643_s6 + $0x50] sm:$0xff] }
 0x4b5   : > { %v3839_v32 = vpop.f32.mrf.mxu0  ;;  %v3882_v34 = vpop.f32.mrf.mxu1  ;;  %4449 = vmatprep.subr.bf16.mxu1 %v6440_v28  ;;  %v7287_v13 = vld [vmem:[%s7658_s29 + $0xb0] sm:$0xff]   ;;  %v7293_v28 = vld [vmem:[%s7658_s29 + $0xe0] sm:$0xff]  }
 0x4b6   : > { %v3989_v40 = vsel %vm897_vm2, %v3882_v34, 0.0  ;;  %v6416_v32 = vld [vmem:[%s8466_s28] ss:$0 sm:$0xff] }
 0x4b7   : > { %v7195_v38 = vpop.f32.mrf.mxu0  ;;  %v7200_v39 = vpop.f32.mrf.mxu1  ;;  %v3990_v47 = vadd.f32 %v3989_v40, %v3988_v42 }
 0x4b8   : > { %v4038_v38 = vld [vmem:[%s7643_s6 + $0x18] sm:$0xff] }
 0x4b9   : > { %v3885_v43 = vpop.f32.mrf.mxu1  ;;  %v3928_v45 = vpop.f32.mrf.mxu0  ;;  %v4046_v39 = vld [vmem:[%s7643_s6 + $0x58] sm:$0xff] }
 0x4ba   : > { %v3991_v46 = vsel %vm897_vm2, %v3928_v45, 0.0  ;;  %v6422_v43 = vcombine.high %v4037_v35, %v4045_v37  ;;  %v6424_v45 = vcombine.high %v4038_v38, %v4046_v39 }
 0x4bb   : > { %v7201_v48 = vpop.f32.mrf.mxu1  ;;  %v7206_v50 = vpop.f32.mrf.mxu0  ;;  %v3992_v51 = vadd.f32 %v3991_v46, %v3990_v47  ;;  %v4055_v46 = vld [vmem:[%s7643_s6 + $0xa0] sm:$0xff] }
 0x4bc   : > { %v4063_v47 = vld [vmem:[%s7643_s6 + $0xe0] sm:$0xff]  ;;  %v4056_v48 = vld [vmem:[%s7643_s6 + $0xa8] sm:$0xff] }
 0x4bd   : > { %v3931_v53 = vpop.f32.mrf.mxu0  ;;  %v3974_v54 = vpop.f32.mrf.mxu1  ;;  %v4064_v50 = vld [vmem:[%s7643_s6 + $0xe8] sm:$0xff] }
 0x4be   : > { %v3993_v55 = vsel %vm897_vm2, %v3974_v54, 0.0  ;;  %v6423_v53 = vcombine.low %v4038_v38, %v4046_v39  ;;  %v6442_v54 = vcombine.high %v4055_v46, %v4063_v47  ;;  %v7304_v38 = vld [vmem:[%s7658_s29 + $0x48] sm:$0xff]  }
 0x4bf   : > { %v3994_v57 = vadd.f32 %v3993_v55, %v3992_v51  ;;  %v7207_v58 = vpop.f32.mrf.mxu0  ;;  %v7212_v59 = vpop.f32.mrf.mxu1  ;;  %v6421_v51 = vcombine.low %v4037_v35, %v4045_v37  ;;  %v6444_v55 = vcombine.high %v4056_v48, %v4064_v50  ;;  %v7302_v35 = vld [vmem:[%s7658_s29 + $0x10] sm:$0xff]   ;;  %v7305_v39 = vld [vmem:[%s7658_s29 + $0xc8] sm:$0xff]  }
 0x4c0   : > { %v4040_v58 = vld [vmem:[%s7643_s6 + $0x28] sm:$0xff]  ;;  %v7303_v37 = vld [vmem:[%s7658_s29 + $0x90] sm:$0xff]  }
 0x4c1   : > { %v4002_v60 = vadd.f32 %v6414_v56, %v3994_v57  ;;  %v3977_v61 = vpop.f32.mrf.mxu1  ;;  %v4039_v56 = vld [vmem:[%s7643_s6 + $0x20] sm:$0xff]  ;;  %v4048_v59 = vld [vmem:[%s7643_s6 + $0x68] sm:$0xff] }
 0x4c2   : > { %v4047_v57 = vld [vmem:[%s7643_s6 + $0x60] sm:$0xff]  ;;  %v6443_v61 = vcombine.low %v4056_v48, %v4064_v50  ;;  %v7312_v50 = vld [vmem:[%s7658_s29 + $0x178] sm:$0xff]  }
 0x4c3   : > { %v7213_v62 = vpop.f32.mrf.mxu1  ;;  %v4003_v0 = vadd.f32 %v7444_v63, %v4002_v60  ;;  %v6441_v60 = vcombine.low %v4055_v46, %v4063_v47  ;;  %v6428_v63 = vcombine.high %v4040_v58, %v4048_v59  ;;  %v7309_v46 = vld [vmem:[%s7658_s29 + $0xc0] sm:$0xff]  }
 0x4c4   : > { %v6426_v62 = vcombine.high %v4039_v56, %v4047_v57  ;;  %v7310_v47 = vld [vmem:[%s7658_s29] sm:$0xff]  }
 0x4c5   : > { %v4006_v1 = vsel %vm897_vm2, %v4003_v0, 0.0  ;;  %v7311_v48 = vld [vmem:[%s7658_s29 + $0x80] sm:$0xff]  }
 0x4c6   : > { %4007 = vadd.xlane.f32.xlu0 %v4006_v1  ;;  %v4065_v1 = vld [vmem:[%s7643_s6 + $0xf0] sm:$0xff] }
 0x54f   : > { %v4008_v3 = vpop.xlane.xlu0 %4007 }
 0x550   : > { %v4010_v4 = vmul.f32 0.03125, %v4008_v3  ;;  %v4058_v3 = vld [vmem:[%s7643_s6 + $0xb8] sm:$0xff] }
 0x552   : > { %v4011_v7 = vsub.f32 %v4003_v0, %v4010_v4  ;;  %v4057_v0 = vld [vmem:[%s7643_s6 + $0xb0] sm:$0xff]  ;;  %v4066_v4 = vld [vmem:[%s7643_s6 + $0xf8] sm:$0xff] }
 0x553   : > { %v6448_v9 = vcombine.high %v4058_v3, %v4066_v4  ;;  %v6445_v15 = vcombine.low %v4057_v0, %v4065_v1  ;;  %v6447_v16 = vcombine.low %v4058_v3, %v4066_v4 }
 0x554   : > { %v4012_v8 = vmul.f32 %v4011_v7, %v4011_v7 }
 0x556   : > { %v4013_v5 = vsel %vm897_vm2, %v4012_v8, 0.0  ;;  %v6427_v8 = vcombine.low %v4040_v58, %v4048_v59 }
 0x557   : > { %4014 = vadd.xlane.f32.xlu1 %v4013_v5  ;;  %v6446_v5 = vcombine.high %v4057_v0, %v4065_v1 }
 0x5e0   : > { %v4015_v29 = vpop.xlane.xlu1 %4014 }
 0x5e1   : > { %v4016_v44 = vmul.f32 0.03125, %v4015_v29  ;;  %v7294_v29 = vld [vmem:[%s7658_s29 + $0x20] sm:$0xff]  }
 0x5e3   : > { %v4017_v49 = vadd.f32 1e-05, %v4016_v44  ;;  %v7295_v44 = vld [vmem:[%s7658_s29 + $0xa0] sm:$0xff]  }
 0x5e5   : > { %7440 = vrsqrt.f32 %v4017_v49  ;;  %v7296_v49 = vld [vmem:[%s7658_s29 + $0x58] sm:$0xff]  }
 0x5f2   : > { %v7441_v52 = vpop.eup %7440 }
 0x5f3   : > { %v4019_v31 = vmul.f32 %v7441_v52, %v4011_v7  ;;  %v6425_v7 = vcombine.low %v4039_v56, %v4047_v57  ;;  %v7297_v52 = vld [vmem:[%s7658_s29 + $0xd8] sm:$0xff]   ;;  %v8200_v56 = vld [vmem:[%s7648_s23 + $0x8] sm:$0xff] }
 0x5f5   : > { %v4026_v34 = vmul.f32 %v6415_v30, %v4019_v31  ;;  %v7298_v30 = vld [vmem:[%s7658_s29 + $0x18] sm:$0xff]  }
 0x5f6   : > { %v7299_v31 = vld [vmem:[%s7658_s29 + $0x98] sm:$0xff]  }
 0x5f7   : > { %v8118_v40 = vadd.f32 %v6416_v32, %v4026_v34  ;;  %v7300_v32 = vld [vmem:[%s7658_s29 + $0x50] sm:$0xff]  }
 0x5f8   : > { %v7301_v34 = vld [vmem:[%s7658_s29 + $0xd0] sm:$0xff]  }
 0x5f9   : > { %v8122_v42 = vpack.c.bf16 %v8118_v40, %v8118_v40 }
 0x5fb   : > { %6449 = vmatmul.mubr.msk.bf16.vlgmr.msra.gmra.mxu0 %vm897_vm2, %v8122_v42  ;;  %6450 = vmatmul.mubr.msk.bf16.vlgmr.msra.gmra.mxu1 %vm897_vm2, %v8122_v42 }
 0x5fc   : > { %4409 = vmatpush1.bf16.msra.mxu0 %v6437_v41  ;;  %4450 = vmatpush1.bf16.msra.mxu1 %v6439_v27  ;;  %v7289_v41 = vld [vmem:[%s7658_s29 + $0xe8] sm:$0xff]   ;;  %v7292_v27 = vld [vmem:[%s7658_s29 + $0x60] sm:$0xff]  }
 0x5fd   : > { %4410 = vmatprep.subr.bf16.mxu0 %v6422_v43  ;;  %4451 = vmatprep.subr.bf16.mxu1 %v6424_v45  ;;  %v7307_v43 = vld [vmem:[%s7658_s29 + $0x88] sm:$0xff]   ;;  %v7308_v45 = vld [vmem:[%s7658_s29 + $0x40] sm:$0xff]  }
 0x5fe   : > { %4428 = vmatprep.mubr.bf16.mxu0 %v7483_v25  ;;  %4469 = vmatprep.mubr.bf16.mxu1 %v7483_v25 }
 0x600   : > { %4411 = vmatpush1.bf16.msra.mxu0 %v6421_v51  ;;  %4452 = vmatpush1.bf16.msra.mxu1 %v6423_v53  ;;  %v7313_v51 = vld [vmem:[%s7658_s29 + $0x1f8] sm:$0xff]   ;;  %v4071_v53 = vlaneseq }
 0x601   : > { %4490 = vmatprep.subr.bf16.mxu0 %v6442_v54  ;;  %4531 = vmatprep.subr.bf16.mxu1 %v6444_v55 }
 0x602   : > { %v8196_v54 = vshrl.u32 %v4071_v53, 7 }
 0x603   : > { %6451 = vmatmul.mubr.msk.bf16.vlgmr.msra.gmra.mxu0 %vm897_vm2, %v8122_v42  ;;  %6452 = vmatmul.mubr.msk.bf16.vlgmr.msra.gmra.mxu1 %vm897_vm2, %v8122_v42 }
 0x604   : > { %4491 = vmatpush1.bf16.msra.mxu0 %v6441_v60  ;;  %4532 = vmatpush1.bf16.msra.mxu1 %v6443_v61  ;;  %v4097_v55 = vsub.s32 6, %v8196_v54  ;;  %v4073_v58 = vsub.s32 0, %v8196_v54  ;;  %v4081_v59 = vsub.s32 2, %v8196_v54  ;;  %v8210_v60 = vld [vmem:[%s7648_s23] sm:$0xff]  ;;  %v4077_v61 = vsub.s32 1, %v8196_v54 }
 0x605   : > { %4492 = vmatprep.subr.bf16.mxu0 %v6426_v62  ;;  %4533 = vmatprep.subr.bf16.mxu1 %v6428_v63  ;;  %v4085_v62 = vsub.s32 3, %v8196_v54  ;;  %v4093_v12 = vsub.s32 5, %v8196_v54 }
 0x606   : > { %4510 = vmatprep.mubr.bf16.mxu0 %v7483_v25  ;;  %4551 = vmatprep.mubr.bf16.mxu1 %v7483_v25  ;;  %v8205_v57 = vrot.slane %v8200_v56, %v4097_v55  ;;  %v4074_v63 = vrot.slane %v8210_v60, %v4073_v58  ;;  %v4082_v0 = vrot.slane %v8210_v60, %v4081_v59 }
 0x607   : > { %v4078_v1 = vrot.slane %v8210_v60, %v4077_v61  ;;  %v4086_v3 = vrot.slane %v8210_v60, %v4085_v62 }
 0x608   : > { %4493 = vmatpush1.bf16.msra.mxu0 %v6425_v7  ;;  %4534 = vmatpush1.bf16.msra.mxu1 %v6427_v8 }
 0x609   : > { %4572 = vmatprep.subr.bf16.mxu0 %v6446_v5  ;;  %4613 = vmatprep.subr.bf16.mxu1 %v6448_v9 }
 0x60b   : > { %6453 = vmatmul.mubr.msk.bf16.vlgmr.msra.gmra.mxu0 %vm897_vm2, %v8122_v42  ;;  %6454 = vmatmul.mubr.msk.bf16.vlgmr.msra.gmra.mxu1 %vm897_vm2, %v8122_v42 }
 0x60c   : > { %4573 = vmatpush1.bf16.msra.mxu0 %v6445_v15  ;;  %4614 = vmatpush1.bf16.msra.mxu1 %v6447_v16  ;;  %v4101_v15 = vsub.s32 7, %v8196_v54 }
 0x60d   : > { %4574 = vmatprep.subr.bf16.mxu0 %v6430_v17  ;;  %4615 = vmatprep.subr.bf16.mxu1 %v6432_v18 }
 0x60e   : > { %4592 = vmatprep.mubr.bf16.mxu0 %v7483_v25  ;;  %4633 = vmatprep.mubr.bf16.mxu1 %v7483_v25  ;;  %v7288_v25 = vld [vmem:[%s7658_s29 + $0x68] sm:$0xff]  }
 0x610   : > { %4575 = vmatpush1.bf16.msra.mxu0 %v6429_v33  ;;  %4616 = vmatpush1.bf16.msra.mxu1 %v6431_v19 }
 0x611   : > { %6718 = vmatprep.subr.bf16.mxu0 %v7280_v20  ;;  %6740 = vmatprep.subr.bf16.mxu1 %v7281_v21 }
 0x613   : > { %6455 = vmatmul.mubr.msk.bf16.vlgmr.msra.gmra.mxu0 %vm897_vm2, %v8122_v42  ;;  %6456 = vmatmul.mubr.msk.bf16.vlgmr.msra.gmra.mxu1 %vm897_vm2, %v8122_v42  ;;  %v7306_v42 = vld [vmem:[%s7658_s29 + $0x8] sm:$0xff]  }
 0x614   : > { %6719 = vmatpush3.bf16.msra.mxu0 %v7282_v22  ;;  %6741 = vmatpush3.bf16.msra.mxu1 %v7283_v23 }
 0x615   : > { %6720 = vmatprep.subr.bf16.mxu0 %v7284_v36  ;;  %6742 = vmatprep.subr.bf16.mxu1 %v7285_v24  ;;  %v4094_v24 = vrot.slane %v8210_v60, %v4093_v12 }
 0x618   : > { %6721 = vmatpush3.bf16.msra.mxu0 %v7286_v2  ;;  %6743 = vmatpush3.bf16.msra.mxu1 %v7287_v13  ;;  %v4102_v2 = vrot.slane %v8210_v60, %v4101_v15  ;;  %v7314_v13 = vld [vmem:[%s7658_s29 + $0x138] sm:$0xff]  }
 0x619   : > { %6722 = vmatprep.subr.bf16.mxu0 %v7288_v25  ;;  %6744 = vmatprep.subr.bf16.mxu1 %v7289_v41  ;;  %v7315_v25 = vld [vmem:[%s7658_s29 + $0x1b8] sm:$0xff]  }
 0x61c   : > { %6723 = vmatpush3.bf16.msra.mxu0 %v7290_v26  ;;  %6745 = vmatpush3.bf16.msra.mxu1 %v7291_v14 }
 0x61d   : > { %6724 = vmatprep.subr.bf16.mxu0 %v7292_v27  ;;  %6746 = vmatprep.subr.bf16.mxu1 %v7293_v28  ;;  %v7316_v28 = vld [vmem:[%s7658_s29 + $0x170] sm:$0xff]  }
 0x620   : > { %6725 = vmatpush3.bf16.msra.mxu0 %v7294_v29  ;;  %6747 = vmatpush3.bf16.msra.mxu1 %v7295_v44  ;;  %v7317_v29 = vld [vmem:[%s7658_s29 + $0x1f0] sm:$0xff]  }
 0x621   : > { %6726 = vmatprep.subr.bf16.mxu0 %v7296_v49  ;;  %6748 = vmatprep.subr.bf16.mxu1 %v7297_v52 }
 0x624   : > { %6727 = vmatpush3.bf16.msra.mxu0 %v7298_v30  ;;  %6749 = vmatpush3.bf16.msra.mxu1 %v7299_v31  ;;  %v7318_v31 = vld [vmem:[%s7658_s29 + $0x130] sm:$0xff]  }
 0x625   : > { %6728 = vmatprep.subr.bf16.mxu0 %v7300_v32  ;;  %6750 = vmatprep.subr.bf16.mxu1 %v7301_v34  ;;  %v7319_v32 = vld [vmem:[%s7658_s29 + $0x1b0] sm:$0xff]  }
 0x628   : > { %6729 = vmatpush3.bf16.msra.mxu0 %v7302_v35  ;;  %6751 = vmatpush3.bf16.msra.mxu1 %v7303_v37  ;;  %v7320_v37 = vld [vmem:[%s7658_s29 + $0x168] sm:$0xff]  }
 0x629   : > { %6730 = vmatprep.subr.bf16.mxu0 %v7304_v38  ;;  %6752 = vmatprep.subr.bf16.mxu1 %v7305_v39  ;;  %v7321_v38 = vld [vmem:[%s7658_s29 + $0x1e8] sm:$0xff]  }
 0x62c   : > { %6731 = vmatpush3.bf16.msra.mxu0 %v7306_v42  ;;  %6753 = vmatpush3.bf16.msra.mxu1 %v7307_v43 }
 0x62d   : > { %6732 = vmatprep.subr.bf16.mxu0 %v7308_v45  ;;  %6754 = vmatprep.subr.bf16.mxu1 %v7309_v46 }
 0x630   : > { %6733 = vmatpush3.bf16.msra.mxu0 %v7310_v47  ;;  %6755 = vmatpush3.bf16.msra.mxu1 %v7311_v48  ;;  %v7322_v48 = vld [vmem:[%s7658_s29 + $0x128] sm:$0xff]  }
 0x631   : > { %6762 = vmatprep.subr.bf16.mxu0 %v7312_v50  ;;  %6784 = vmatprep.subr.bf16.mxu1 %v7313_v51  ;;  %v7323_v50 = vld [vmem:[%s7658_s29 + $0x1a8] sm:$0xff]  }
 0x6bb   : > { %v4348_v4 = vpop.f32.mrf.mxu0  ;;  %v4389_v7 = vpop.f32.mrf.mxu1 }
 0x6bc   : > { %v4349_v8 = vadd.f32 %v4348_v4, %v4074_v63  ;;  %v4390_v5 = vadd.f32 %v4389_v7, %v4082_v0  ;;  %v7324_v63 = vld [vmem:[%s7658_s29 + $0x160] sm:$0xff]   ;;  %v4089_v4 = vsub.s32 4, %v8196_v54 }
 0x6bd   : > { %v4350_v9 = vpop.f32.mrf.mxu0  ;;  %v4391_v10 = vpop.f32.mrf.mxu1  ;;  %v7325_v0 = vld [vmem:[%s7658_s29 + $0x1e0] sm:$0xff]  }
 0x6be   : > { %v4351_v6 = vadd.f32 %v4350_v9, %v4078_v1  ;;  %v4392_v11 = vadd.f32 %v4391_v10, %v4086_v3  ;;  %v4642_v16 = vmax.f32 %v4349_v8, 0.0  ;;  %v4644_v17 = vmax.f32 %v4390_v5, 0.0  ;;  %v7326_v7 = vld [vmem:[%s7658_s29 + $0x120] sm:$0xff]   ;;  %v7328_v10 = vld [vmem:[%s7658_s29 + $0x158] sm:$0xff]  }
 0x6bf   : > { %v4352_v18 = vpop.f32.mrf.mxu0  ;;  %v4393_v33 = vpop.f32.mrf.mxu1  ;;  %v7327_v8 = vld [vmem:[%s7658_s29 + $0x1a0] sm:$0xff]  }
 0x6c0   : > { %v4643_v19 = vmax.f32 %v4351_v6, 0.0  ;;  %v4645_v20 = vmax.f32 %v4392_v11, 0.0  ;;  %v4658_v41 = vpack.c.bf16 %v4642_v16, %v4642_v16  ;;  %v4660_v26 = vpack.c.bf16 %v4644_v17, %v4644_v17  ;;  %v7329_v6 = vld [vmem:[%s7658_s29 + $0x1d8] sm:$0xff]  }
 0x6c1   : > { %v4353_v21 = vpop.f32.mrf.mxu0  ;;  %v4394_v22 = vpop.f32.mrf.mxu1  ;;  %v4122_v11 = vrot.slane %v8200_v56, %v4089_v4  ;;  %v7330_v18 = vld [vmem:[%s7658_s29 + $0x118] sm:$0xff]  }
 0x6c2   : > { %v4659_v23 = vpack.c.bf16 %v4643_v19, %v4643_v19  ;;  %v4661_v36 = vpack.c.bf16 %v4645_v20, %v4645_v20  ;;  %v7331_v33 = vld [vmem:[%s7658_s29 + $0x198] sm:$0xff]   ;;  %v7332_v21 = vld [vmem:[%s7658_s29 + $0x150] sm:$0xff]  }
 0x6c3   : > { %v8236_v14 = vpop.f32.mrf.mxu0  ;;  %v8238_v27 = vpop.f32.mrf.mxu1  ;;  %v7333_v22 = vld [vmem:[%s7658_s29 + $0x1d0] sm:$0xff]  }
 0x6c4   : > { %5737 = vmatprep.mubr.bf16.mxu0 %v4659_v23  ;;  %5777 = vmatprep.mubr.bf16.mxu1 %v4661_v36 }
 0x6c5   : > { %v4432_v44 = vpop.f32.mrf.mxu0  ;;  %v4473_v49 = vpop.f32.mrf.mxu1  ;;  %5738 = vmatmul.mubr.bf16.vlgmr.msra.gmra.mxu0 %v4658_v41  ;;  %5778 = vmatmul.mubr.bf16.vlgmr.msra.gmra.mxu1 %v4660_v26  ;;  %v4090_v41 = vrot.slane %v8210_v60, %v4089_v4  ;;  %v4098_v26 = vrot.slane %v8210_v60, %v4097_v55  ;;  %v7338_v55 = vld [vmem:[%s7658_s29 + $0x108] sm:$0xff]  }
 0x6c6   : > { %v4433_v52 = vadd.f32 %v4432_v44, %v4094_v24  ;;  %v4474_v30 = vadd.f32 %v4473_v49, %v4102_v2  ;;  %6763 = vmatpush3.bf16.msra.mxu0 %v7314_v13  ;;  %6785 = vmatpush3.bf16.msra.mxu1 %v7315_v25  ;;  %v7334_v13 = vld [vmem:[%s7658_s29 + $0x110] sm:$0xff]   ;;  %v7337_v44 = vld [vmem:[%s7658_s29 + $0x1c8] sm:$0xff]   ;;  %v4110_v49 = vrot.slane %v8200_v56, %v4077_v61  ;;  %v7340_v61 = vld [vmem:[%s7658_s29 + $0x140] sm:$0xff]  }
 0x6c7   : > { %v4434_v34 = vpop.f32.mrf.mxu0  ;;  %v4475_v35 = vpop.f32.mrf.mxu1  ;;  %6764 = vmatprep.subr.bf16.mxu0 %v7316_v28  ;;  %6786 = vmatprep.subr.bf16.mxu1 %v7317_v29  ;;  %v7335_v25 = vld [vmem:[%s7658_s29 + $0x190] sm:$0xff]   ;;  %v7339_v60 = vld [vmem:[%s7658_s29 + $0x188] sm:$0xff]  }
 0x6c8   : > { %v4647_v39 = vmax.f32 %v4433_v52, 0.0  ;;  %v4649_v42 = vmax.f32 %v4474_v30, 0.0  ;;  %v4118_v52 = vrot.slane %v8200_v56, %v4085_v62  ;;  %v4472_v34 = vadd.f32 %v8238_v27, %v4098_v26  ;;  %v7341_v35 = vld [vmem:[%s7658_s29 + $0x1c0] sm:$0xff]   ;;  %v7345_v27 = vld [vmem:[%s7658_s29 + $0x2f8] sm:$0xff]   ;;  %v7367_v26 = vld [vmem:[%s7658_s29 + $0x290] sm:$0xff]  }
 0x6c9   : > { %v4435_v43 = vpop.f32.mrf.mxu0  ;;  %v4476_v45 = vpop.f32.mrf.mxu1 }
 0x6ca   : > { %v4663_v46 = vpack.c.bf16 %v4647_v39, %v4647_v39  ;;  %v4665_v47 = vpack.c.bf16 %v4649_v42, %v4649_v42  ;;  %6765 = vmatpush3.bf16.msra.mxu0 %v7318_v31  ;;  %6787 = vmatpush3.bf16.msra.mxu1 %v7319_v32  ;;  %v4431_v32 = vadd.f32 %v8236_v14, %v4090_v41  ;;  %v7343_v39 = vld [vmem:[%s7658_s29 + $0x180] sm:$0xff]   ;;  %v4648_v43 = vmax.f32 %v4472_v34, 0.0  ;;  %v7344_v14 = vld [vmem:[%s7658_s29 + $0x278] sm:$0xff]  }
 0x6cb   : > { %v8248_v51 = vpop.f32.mrf.mxu0  ;;  %v8250_v53 = vpop.f32.mrf.mxu1  ;;  %6766 = vmatprep.subr.bf16.mxu0 %v7320_v37  ;;  %6788 = vmatprep.subr.bf16.mxu1 %v7321_v38  ;;  %v7342_v38 = vld [vmem:[%s7658_s29 + $0x100] sm:$0xff]   ;;  %v4106_v41 = vrot.slane %v8200_v56, %v4073_v58  ;;  %v4134_v58 = vrot.slane %v8200_v56, %v4101_v15 }
 0x6cc   : > { %5817 = vmatprep.mubr.bf16.mxu0 %v4663_v46  ;;  %5857 = vmatprep.mubr.bf16.mxu1 %v4665_v47  ;;  %v4646_v42 = vmax.f32 %v4431_v32, 0.0  ;;  %v7346_v47 = vld [vmem:[%s7658_s29 + $0x238] sm:$0xff]  }
 0x6cd   : > { %v4514_v1 = vpop.f32.mrf.mxu0  ;;  %v4555_v3 = vpop.f32.mrf.mxu1 }
 0x6ce   : > { %6767 = vmatpush3.bf16.msra.mxu0 %v7322_v48  ;;  %6789 = vmatpush3.bf16.msra.mxu1 %v7323_v50  ;;  %v4515_v37 = vadd.f32 %v4514_v1, %v4110_v49  ;;  %v4556_v62 = vadd.f32 %v4555_v3, %v4118_v52  ;;  %v4662_v48 = vpack.c.bf16 %v4646_v42, %v4646_v42  ;;  %v7348_v1 = vld [vmem:[%s7658_s29 + $0x270] sm:$0xff]   ;;  %v7370_v49 = vld [vmem:[%s7658_s29 + $0x208] sm:$0xff]  }
 0x6cf   : > { %v4516_v5 = vpop.f32.mrf.mxu0  ;;  %v4557_v9 = vpop.f32.mrf.mxu1  ;;  %6768 = vmatprep.subr.bf16.mxu0 %v7324_v63  ;;  %6790 = vmatprep.subr.bf16.mxu1 %v7325_v0  ;;  %v4664_v50 = vpack.c.bf16 %v4648_v43, %v4648_v43  ;;  %v7347_v63 = vld [vmem:[%s7658_s29 + $0x2b8] sm:$0xff]   ;;  %v7349_v3 = vld [vmem:[%s7658_s29 + $0x2f0] sm:$0xff]   ;;  %v4513_v52 = vadd.f32 %v8248_v51, %v4106_v41  ;;  %v7375_v51 = vld [vmem:[%s7658_s29 + $0x280] sm:$0xff]  }
 0x6d0   : > { %v4651_v45 = vmax.f32 %v4515_v37, 0.0  ;;  %v4653_v46 = vmax.f32 %v4556_v62, 0.0  ;;  %v7352_v5 = vld [vmem:[%s7658_s29 + $0x268] sm:$0xff]   ;;  %v7380_v62 = vld [vmem:[%s7658_s29 + $0x370] sm:$0xff]  }
 0x6d1   : > { %v4517_v16 = vpop.f32.mrf.mxu0  ;;  %v4558_v17 = vpop.f32.mrf.mxu1  ;;  %v7353_v9 = vld [vmem:[%s7658_s29 + $0x2e8] sm:$0xff]   ;;  %v4650_v15 = vmax.f32 %v4513_v52, 0.0  ;;  %v7382_v43 = vld [vmem:[%s7658_s29 + $0x330] sm:$0xff]  }
 0x6d2   : > { %6769 = vmatpush3.bf16.msra.mxu0 %v7326_v7  ;;  %6791 = vmatpush3.bf16.msra.mxu1 %v7327_v8  ;;  %v4667_v0 = vpack.c.bf16 %v4651_v45, %v4651_v45  ;;  %v4669_v4 = vpack.c.bf16 %v4653_v46, %v4653_v46  ;;  %v7350_v7 = vld [vmem:[%s7658_s29 + $0x230] sm:$0xff]   ;;  %v7357_v16 = vld [vmem:[%s7658_s29 + $0x2e0] sm:$0xff]   ;;  %v7385_v45 = vld [vmem:[%s7658_s29 + $0x3e8] sm:$0xff]  }
 0x6d3   : > { %v4594_v19 = vpop.f32.mrf.mxu0  ;;  %v4635_v20 = vpop.f32.mrf.mxu1  ;;  %6770 = vmatprep.subr.bf16.mxu0 %v7328_v10  ;;  %6792 = vmatprep.subr.bf16.mxu1 %v7329_v6  ;;  %v7351_v8 = vld [vmem:[%s7658_s29 + $0x2b0] sm:$0xff]   ;;  %v7354_v10 = vld [vmem:[%s7658_s29 + $0x228] sm:$0xff]   ;;  %v7358_v17 = vld [vmem:[%s7658_s29 + $0x220] sm:$0xff]  }
 0x6d4   : > { %v8264_v23 = vadd.f32 %v4594_v19, %v4122_v11  ;;  %v8267_v36 = vadd.f32 %v4635_v20, %v8205_v57  ;;  %v7336_v57 = vld [vmem:[%s7658_s29 + $0x148] sm:$0xff]   ;;  %v7356_v11 = vld [vmem:[%s7658_s29 + $0x260] sm:$0xff]   ;;  %v7361_v19 = vld [vmem:[%s7658_s29 + $0x2d8] sm:$0xff]  }
 0x6d5   : > { %v8269_v24 = vpop.f32.mrf.mxu0  ;;  %v8271_v2 = vpop.f32.mrf.mxu1  ;;  %v7355_v6 = vld [vmem:[%s7658_s29 + $0x2a8] sm:$0xff]   ;;  %v7362_v20 = vld [vmem:[%s7658_s29 + $0x218] sm:$0xff]  }
 0x6d6   : > { %6771 = vmatpush3.bf16.msra.mxu0 %v7330_v18  ;;  %6793 = vmatpush3.bf16.msra.mxu1 %v7331_v33  ;;  %v7359_v18 = vld [vmem:[%s7658_s29 + $0x2a0] sm:$0xff]   ;;  %v7360_v33 = vld [vmem:[%s7658_s29 + $0x258] sm:$0xff]   ;;  %v7386_v46 = vld [vmem:[%s7658_s29 + $0x328] sm:$0xff]  }
 0x6d7   : > { %v4598_v28 = vpop.f32.mrf.mxu0  ;;  %v4639_v29 = vpop.f32.mrf.mxu1  ;;  %6772 = vmatprep.subr.bf16.mxu0 %v7332_v21  ;;  %6794 = vmatprep.subr.bf16.mxu1 %v7333_v22  ;;  %v7363_v21 = vld [vmem:[%s7658_s29 + $0x298] sm:$0xff]   ;;  %v7364_v22 = vld [vmem:[%s7658_s29 + $0x250] sm:$0xff]  }
 0x6d8   : > { %v7368_v28 = vld [vmem:[%s7658_s29 + $0x248] sm:$0xff]   ;;  %v4114_v29 = vrot.slane %v8200_v56, %v4081_v59 }
 0x6d9   : > { %v4599_v30 = vpop.f32.mrf.mxu0  ;;  %v4640_v31 = vpop.f32.mrf.mxu1  ;;  %v7371_v59 = vld [vmem:[%s7658_s29 + $0x288] sm:$0xff]  }
 0x6da   : > { %6773 = vmatpush3.bf16.msra.mxu0 %v7334_v13  ;;  %6795 = vmatpush3.bf16.msra.mxu1 %v7335_v25  ;;  %v7365_v13 = vld [vmem:[%s7658_s29 + $0x2d0] sm:$0xff]   ;;  %v7372_v30 = vld [vmem:[%s7658_s29 + $0x240] sm:$0xff]   ;;  %v4554_v31 = vadd.f32 %v8250_v53, %v4114_v29  ;;  %v7377_v53 = vld [vmem:[%s7658_s29 + $0x3f8] sm:$0xff]  }
 0x6db   : > { %6774 = vmatprep.subr.bf16.mxu0 %v7336_v57  ;;  %6796 = vmatprep.subr.bf16.mxu1 %v7337_v44  ;;  %v7366_v25 = vld [vmem:[%s7658_s29 + $0x210] sm:$0xff]   ;;  %v7369_v57 = vld [vmem:[%s7658_s29 + $0x2c8] sm:$0xff]   ;;  %v4126_v44 = vrot.slane %v8200_v56, %v4093_v12  ;;  %v4638_v56 = vadd.f32 %v8271_v2, %v4134_v58  ;;  %v7374_v12 = vld [vmem:[%s7658_s29 + $0x200] sm:$0xff]  }
 0x6dc   : > { %v4652_v32 = vmax.f32 %v4554_v31, 0.0  ;;  %v7379_v2 = vld [vmem:[%s7658_s29 + $0x3b8] sm:$0xff]  }
 0x6dd   : > { %v4597_v54 = vadd.f32 %v8269_v24, %v4126_v44  ;;  %v7378_v24 = vld [vmem:[%s7658_s29 + $0x338] sm:$0xff]  }
 0x6de   : > { %6775 = vmatpush3.bf16.msra.mxu0 %v7338_v55  ;;  %6797 = vmatpush3.bf16.msra.mxu1 %v7339_v60  ;;  %v7373_v55 = vld [vmem:[%s7658_s29 + $0x2c0] sm:$0xff]   ;;  %v7376_v60 = vld [vmem:[%s7658_s29 + $0x378] sm:$0xff]   ;;  %v4668_v37 = vpack.c.bf16 %v4652_v32, %v4652_v32 }
 0x6df   : > { %6776 = vmatprep.subr.bf16.mxu0 %v7340_v61  ;;  %6798 = vmatprep.subr.bf16.mxu1 %v7341_v35  ;;  %v4655_v34 = vmax.f32 %v4597_v54, 0.0  ;;  %v4657_v61 = vmax.f32 %v4638_v56, 0.0  ;;  %v4666_v35 = vpack.c.bf16 %v4650_v15, %v4650_v15 }
 0x6e1   : > { %v4673_v42 = vpack.c.bf16 %v4657_v61, %v4657_v61 }
 0x6e2   : > { %6777 = vmatpush3.bf16.msra.mxu0 %v7342_v38  ;;  %6799 = vmatpush3.bf16.msra.mxu1 %v7343_v39  ;;  %v4671_v38 = vpack.c.bf16 %v4655_v34, %v4655_v34  ;;  %v7381_v39 = vld [vmem:[%s7658_s29 + $0x3f0] sm:$0xff]  }
 0x6e3   : > { %6806 = vmatprep.subr.bf16.mxu0 %v7344_v14  ;;  %6828 = vmatprep.subr.bf16.mxu1 %v7345_v27  ;;  %v7383_v14 = vld [vmem:[%s7658_s29 + $0x3b0] sm:$0xff]   ;;  %v7384_v27 = vld [vmem:[%s7658_s29 + $0x368] sm:$0xff]  }
 0x6e5   : > { %5818 = vmatmul.mubr.bf16.vlgmr.msra.gmra.mxu0 %v4662_v48  ;;  %5858 = vmatmul.mubr.bf16.vlgmr.msra.gmra.mxu1 %v4664_v50  ;;  %v7388_v48 = vld [vmem:[%s7658_s29 + $0x360] sm:$0xff]  }
 0x6e6   : > { %6807 = vmatpush3.bf16.msra.mxu0 %v7346_v47  ;;  %5897 = vmatprep.mubr.bf16.mxu0 %v4667_v0  ;;  %v7387_v47 = vld [vmem:[%s7658_s29 + $0x3a8] sm:$0xff]   ;;  %v7389_v50 = vld [vmem:[%s7658_s29 + $0x3e0] sm:$0xff]  }
 0x6e7   : > { %6829 = vmatpush3.bf16.msra.mxu1 %v7347_v63  ;;  %5937 = vmatprep.mubr.bf16.mxu1 %v4669_v4  ;;  %v7390_v63 = vld [vmem:[%s7658_s29 + $0x320] sm:$0xff]   ;;  %v7394_v4 = vld [vmem:[%s7658_s29 + $0x318] sm:$0xff]  }
 0x6e8   : > { %6808 = vmatprep.subr.bf16.mxu0 %v7348_v1  ;;  %6830 = vmatprep.subr.bf16.mxu1 %v7349_v3  ;;  %v7391_v0 = vld [vmem:[%s7658_s29 + $0x3a0] sm:$0xff]   ;;  %v7392_v1 = vld [vmem:[%s7658_s29 + $0x358] sm:$0xff]  }
 0x6e9   : > { %v7393_v3 = vld [vmem:[%s7658_s29 + $0x3d8] sm:$0xff]  }
 0x6ea   : > { %6809 = vmatpush3.bf16.msra.mxu0 %v7350_v7  ;;  %v7395_v7 = vld [vmem:[%s7658_s29 + $0x398] sm:$0xff]  }
 0x6eb   : > { %6831 = vmatpush3.bf16.msra.mxu1 %v7351_v8  ;;  %6810 = vmatprep.subr.bf16.mxu0 %v7352_v5  ;;  %v7396_v8 = vld [vmem:[%s7658_s29 + $0x350] sm:$0xff]  }
 0x6ec   : > { %6832 = vmatprep.subr.bf16.mxu1 %v7353_v9  ;;  %v7397_v5 = vld [vmem:[%s7658_s29 + $0x3d0] sm:$0xff]  }
 0x6ed   : > { %v7398_v9 = vld [vmem:[%s7658_s29 + $0x310] sm:$0xff]  }
 0x6ee   : > { %6811 = vmatpush3.bf16.msra.mxu0 %v7354_v10  ;;  %v7399_v10 = vld [vmem:[%s7658_s29 + $0x390] sm:$0xff]  }
 0x6ef   : > { %6833 = vmatpush3.bf16.msra.mxu1 %v7355_v6  ;;  %6812 = vmatprep.subr.bf16.mxu0 %v7356_v11  ;;  %v7400_v6 = vld [vmem:[%s7658_s29 + $0x348] sm:$0xff]  }
 0x6f0   : > { %6834 = vmatprep.subr.bf16.mxu1 %v7357_v16  ;;  %v7401_v11 = vld [vmem:[%s7658_s29 + $0x3c8] sm:$0xff]  }
 0x6f1   : > { %v7402_v16 = vld [vmem:[%s7658_s29 + $0x308] sm:$0xff]  }
 0x6f2   : > { %6813 = vmatpush3.bf16.msra.mxu0 %v7358_v17  ;;  %v7403_v17 = vld [vmem:[%s7658_s29 + $0x388] sm:$0xff]  }
 0x6f3   : > { %6835 = vmatpush3.bf16.msra.mxu1 %v7359_v18  ;;  %6814 = vmatprep.subr.bf16.mxu0 %v7360_v33  ;;  %v7404_v18 = vld [vmem:[%s7658_s29 + $0x340] sm:$0xff]  }
 0x6f4   : > { %6836 = vmatprep.subr.bf16.mxu1 %v7361_v19  ;;  %v7405_v33 = vld [vmem:[%s7658_s29 + $0x3c0] sm:$0xff]  }
 0x6f5   : > { %v7406_v19 = vld [vmem:[%s7658_s29 + $0x300] sm:$0xff]  }
 0x6f6   : > { %6815 = vmatpush3.bf16.msra.mxu0 %v7362_v20  ;;  %v4654_v20 = vmax.f32 %v8264_v23, 0.0 }
 0x6f7   : > { %6837 = vmatpush3.bf16.msra.mxu1 %v7363_v21  ;;  %6816 = vmatprep.subr.bf16.mxu0 %v7364_v22  ;;  %v7407_v21 = vld [vmem:[%s7658_s29 + $0x380] sm:$0xff]   ;;  %v4656_v22 = vmax.f32 %v8267_v36, 0.0 }
 0x6f8   : > { %6838 = vmatprep.subr.bf16.mxu1 %v7365_v13  ;;  %v4670_v13 = vpack.c.bf16 %v4654_v20, %v4654_v20 }
 0x6fa   : > { %6817 = vmatpush3.bf16.msra.mxu0 %v7366_v25  ;;  %v4672_v25 = vpack.c.bf16 %v4656_v22, %v4656_v22 }
 0x6fb   : > { %6839 = vmatpush3.bf16.msra.mxu1 %v7367_v26  ;;  %6818 = vmatprep.subr.bf16.mxu0 %v7368_v28  ;;  %v6457_v28 = vld [vmem:[%s780_s4] ss:$0 sm:$0xff]  ;;  %s8467_s4 = sld [smem:[#allocation7_spill]] }
 0x6fc   : > { %6840 = vmatprep.subr.bf16.mxu1 %v7369_v57 }
 0x6fe   : > { %6819 = vmatpush3.bf16.msra.mxu0 %v7370_v49 }
 0x6ff   : > { %6841 = vmatpush3.bf16.msra.mxu1 %v7371_v59  ;;  %6820 = vmatprep.subr.bf16.mxu0 %v7372_v30 }
 0x700   : > { %6842 = vmatprep.subr.bf16.mxu1 %v7373_v55 }
 0x701   : > { %p7218_p5 = scmp.eq.s32.totalorder %s8467_s4, 1 }
 0x702   : > { %6821 = vmatpush3.bf16.msra.mxu0 %v7374_v12 }
 0x703   : > { %6843 = vmatpush3.bf16.msra.mxu1 %v7375_v51  ;;  %6850 = vmatprep.subr.bf16.mxu0 %v7376_v60  ;;  %p7447_p7 = pnand %p7446_p6, %p7218_p5 }
 0x704   : > { %6872 = vmatprep.subr.bf16.mxu1 %v7377_v53 }
 0x705   : > { %5898 = vmatmul.mubr.bf16.vlgmr.msra.gmra.mxu0 %v4666_v35  ;;  %p7448_p8 = pneg %p7447_p7 }
 0x706   : > { %5938 = vmatmul.mubr.bf16.vlgmr.msra.gmra.mxu1 %v4668_v37  ;;  %6851 = vmatpush3.bf16.msra.mxu0 %v7378_v24 }
 0x707   : > { %5977 = vmatprep.mubr.bf16.mxu0 %v4671_v38  ;;  %6873 = vmatpush3.bf16.msra.mxu1 %v7379_v2  ;;  %p7455_p12 = pnand %p7454_p11, %p7448_p8 }
 0x708   : > { %6017 = vmatprep.mubr.bf16.mxu1 %v4673_v42  ;;  %6852 = vmatprep.subr.bf16.mxu0 %v7380_v62 }
 0x709   : > { %6874 = vmatprep.subr.bf16.mxu1 %v7381_v39 }
 0x70a   : > { %6853 = vmatpush3.bf16.msra.mxu0 %v7382_v43 }
 0x70b   : > { %6875 = vmatpush3.bf16.msra.mxu1 %v7383_v14  ;;  %6854 = vmatprep.subr.bf16.mxu0 %v7384_v27 }
 0x70c   : > { %6876 = vmatprep.subr.bf16.mxu1 %v7385_v45 }
 0x70e   : > { %6855 = vmatpush3.bf16.msra.mxu0 %v7386_v46 }
 0x70f   : > { %6877 = vmatpush3.bf16.msra.mxu1 %v7387_v47  ;;  %6856 = vmatprep.subr.bf16.mxu0 %v7388_v48 }
 0x710   : > { %6878 = vmatprep.subr.bf16.mxu1 %v7389_v50 }
 0x712   : > { %6857 = vmatpush3.bf16.msra.mxu0 %v7390_v63 }
 0x713   : > { %6879 = vmatpush3.bf16.msra.mxu1 %v7391_v0  ;;  %6858 = vmatprep.subr.bf16.mxu0 %v7392_v1 }
 0x714   : > { %6880 = vmatprep.subr.bf16.mxu1 %v7393_v3 }
 0x716   : > { %6859 = vmatpush3.bf16.msra.mxu0 %v7394_v4 }
 0x717   : > { %6881 = vmatpush3.bf16.msra.mxu1 %v7395_v7  ;;  %6860 = vmatprep.subr.bf16.mxu0 %v7396_v8 }
 0x718   : > { %6882 = vmatprep.subr.bf16.mxu1 %v7397_v5 }
 0x71a   : > { %6861 = vmatpush3.bf16.msra.mxu0 %v7398_v9 }
 0x71b   : > { %6883 = vmatpush3.bf16.msra.mxu1 %v7399_v10  ;;  %6862 = vmatprep.subr.bf16.mxu0 %v7400_v6 }
 0x71c   : > { %6884 = vmatprep.subr.bf16.mxu1 %v7401_v11 }
 0x71e   : > { %6863 = vmatpush3.bf16.msra.mxu0 %v7402_v16 }
 0x71f   : > { %6885 = vmatpush3.bf16.msra.mxu1 %v7403_v17  ;;  %6864 = vmatprep.subr.bf16.mxu0 %v7404_v18 }
 0x720   : > { %6886 = vmatprep.subr.bf16.mxu1 %v7405_v33 }
 0x722   : > { %6865 = vmatpush3.bf16.msra.mxu0 %v7406_v19 }
 0x723   : > { %6887 = vmatpush3.bf16.msra.mxu1 %v7407_v21 }
 0x725   : > { %5978 = vmatmul.mubr.bf16.vlgmr.msra.gmra.mxu0 %v4670_v13  ;;  %v6587_v13 = vld [vmem:[%s786_s3] ss:$0 sm:$0xff] }
 0x726   : > { %6018 = vmatmul.mubr.bf16.vlgmr.msra.gmra.mxu1 %v4672_v25 }
 0x785   : > { %v6734_v41 = vpop.f32.mrf.mxu0  ;;  %v6756_v26 = vpop.f32.mrf.mxu1 }
 0x787   : > { %v6735_v23 = vpop.f32.mrf.mxu0  ;;  %v6757_v29 = vpop.f32.mrf.mxu1 }
 0x788   : > { %v6736_v57 = vadd.f32 %v6735_v23, %v6734_v41  ;;  %v6758_v44 = vadd.f32 %v6757_v29, %v6756_v26 }
 0x789   : > { %v6737_v58 = vpop.f32.mrf.mxu0  ;;  %v6759_v36 = vpop.f32.mrf.mxu1 }
 0x78a   : > { %v5740_v49 = vadd.f32 %v6736_v57, %v6457_v28 }
 0x78b   : > { %v6738_v52 = vpop.f32.mrf.mxu0  ;;  %v6760_v59 = vpop.f32.mrf.mxu1 }
 0x78c   : > { %v5780_v30 = vadd.f32 %v6758_v44, %v5740_v49 }
 0x7a5   : > { %v6778_v31 = vpop.f32.mrf.mxu0  ;;  %v6800_v55 = vpop.f32.mrf.mxu1 }
 0x7a7   : > { %v6779_v54 = vpop.f32.mrf.mxu0  ;;  %v6801_v56 = vpop.f32.mrf.mxu1 }
 0x7a8   : > { %v6780_v62 = vadd.f32 %v6779_v54, %v6778_v31  ;;  %v6802_v39 = vadd.f32 %v6801_v56, %v6800_v55 }
 0x7a9   : > { %v6781_v12 = vpop.f32.mrf.mxu0  ;;  %v6803_v15 = vpop.f32.mrf.mxu1 }
 0x7aa   : > { %v5820_v38 = vadd.f32 %v6780_v62, %v5780_v30 }
 0x7ab   : > { %v6782_v51 = vpop.f32.mrf.mxu0  ;;  %v6804_v60 = vpop.f32.mrf.mxu1 }
 0x7ac   : > { %v5860_v43 = vadd.f32 %v6802_v39, %v5820_v38 }
 0x7c5   : > { %v6822_v32 = vpop.f32.mrf.mxu0 }
 0x7c6   : > { %v6844_v53 = vpop.f32.mrf.mxu1 }
 0x7c7   : > { %v6823_v34 = vpop.f32.mrf.mxu0 }
 0x7c8   : > { %v6845_v61 = vpop.f32.mrf.mxu1  ;;  %v6824_v42 = vadd.f32 %v6823_v34, %v6822_v32 }
 0x7c9   : > { %v6825_v24 = vpop.f32.mrf.mxu0  ;;  %v6846_v45 = vadd.f32 %v6845_v61, %v6844_v53 }
 0x7ca   : > { %v6847_v35 = vpop.f32.mrf.mxu1  ;;  %v5900_v14 = vadd.f32 %v6824_v42, %v5860_v43 }
 0x7cb   : > { %v6826_v2 = vpop.f32.mrf.mxu0 }
 0x7cc   : > { %v6848_v37 = vpop.f32.mrf.mxu1  ;;  %v5940_v48 = vadd.f32 %v6846_v45, %v5900_v14 }
 0x7e5   : > { %v6866_v27 = vpop.f32.mrf.mxu0 }
 0x7e6   : > { %v6888_v46 = vpop.f32.mrf.mxu1 }
 0x7e7   : > { %v6867_v47 = vpop.f32.mrf.mxu0 }
 0x7e8   : > { %v6868_v50 = vadd.f32 %v6867_v47, %v6866_v27  ;;  %v6889_v63 = vpop.f32.mrf.mxu1 }
 0x7e9   : > { %v6869_v0 = vpop.f32.mrf.mxu0  ;;  %v6890_v3 = vadd.f32 %v6889_v63, %v6888_v46 }
 0x7ea   : > { %v5980_v1 = vadd.f32 %v6868_v50, %v5940_v48  ;;  %v6891_v4 = vpop.f32.mrf.mxu1 }
 0x7eb   : > { %v6870_v7 = vpop.f32.mrf.mxu0 }
 0x7ec   : > { %v6020_v8 = vadd.f32 %v6890_v3, %v5980_v1  ;;  %v6892_v5 = vpop.f32.mrf.mxu1 }
 0x7ee   : > { %v6025_v9 = vadd.f32 %v6020_v8, %v8118_v40  ;;  %v6586_v40 = vld [vmem:[%s783_s5] ss:$0 sm:$0xff] }
 0x7f0   : > { %v6028_v10 = vsel %vm897_vm2, %v6025_v9, 0.0 }
 0x7f1   : > { %6029 = vadd.xlane.f32.xlu0 %v6028_v10 }
 0x87a   : > { %v6030_v6 = vpop.xlane.xlu0 %6029 }
 0x87b   : > { %v6031_v11 = vmul.f32 0.03125, %v6030_v6 }
 0x87d   : > { %v6032_v16 = vsub.f32 %v6025_v9, %v6031_v11 }
 0x87f   : > { %v6033_v17 = vmul.f32 %v6032_v16, %v6032_v16 }
 0x881   : > { %v6034_v18 = vsel %vm897_vm2, %v6033_v17, 0.0 }
 0x882   : > { %6035 = vadd.xlane.f32.xlu1 %v6034_v18 }
 0x90b   : > { %v6036_v33 = vpop.xlane.xlu1 %6035 }
 0x90c   : > { %v6037_v19 = vmul.f32 0.03125, %v6036_v33 }
 0x90e   : > { %v6038_v20 = vadd.f32 1e-05, %v6037_v19 }
 0x910   : > { %7442 = vrsqrt.f32 %v6038_v20 }
 0x91d   : > { %v7443_v21 = vpop.eup %7442 }
 0x91e   : > { %v6040_v22 = vmul.f32 %v7443_v21, %v6032_v16 }
 0x920   : > { %v6047_v25 = vmul.f32 %v6586_v40, %v6040_v22 }
 0x922   : > { %v6054_v41 = vadd.f32 %v6587_v13, %v6047_v25 }
 0x924   : > { %6055 = vst.msk [vmem:[#allocation2] sm:$0xff] %vm897_vm2, %v6054_v41  ;;  %6056 = vst.msk [vmem:[#allocation3] sm:$0xff] %vm897_vm2, %v6054_v41 }
 0x925   : > { %7458 = shalt.err (!%p7455_p12)
}
 0x926   : > { %s8468_s3 = sld [smem:[#allocation20_spill]] }
 0x92c   : > { %7215 = dma.vmem_to_hbm [thread:$0]  (%p7218_p5), %s6065_s11, 128, %s8468_s3, [#allocation4]  }
 0x92d   : > { %7474 = dma.done.wait (%p7218_p5), [#allocation4], 128  }
 0x92e   : > { %7476 = vsyncadd (%p7218_p5), [#allocation4], 4294967168 }
 0x92f PF: > { %s8469_s20 = sld [smem:[#allocation6_spill]] }
 0x935   : > { %s28_s24 = sadd.s32 1, %s8469_s20  }
 0x936   : > { %p25_p13 = scmp.ge.s32.totalorder %s28_s24, 4  }
 0x938   :  { %27 = sbr.rel (!%p25_p13) target bundleno = 12 (0xc), region = 164 }
 0x93d   :  { %6077 = vsyncpa [#allocation4], 1 }
 0x93e   :  { %6079 = vsyncpa [#allocation4 + $0x1], 1 }

</bundles_post_ra>
